<compile_context>
chip_gen: v6e
topology: v6e:2x2x1
jax: 0.10.0
libtpu: 0.0.40
codegen_flags: <defaults>
</compile_context>

<pallas_src>
import functools
import math

import jax
import jax.numpy as jnp
from jax.experimental import pallas as pl
from jax.experimental.pallas import tpu as pltpu

# module constants (from the PyTorch source)
N_EMBD = 128
N_HEADS = 8
HEAD_SIZE = N_EMBD // N_HEADS  # 16


# ---------------------------------------------------------------------------
# Kernel: Bb packed batch elements, all heads + output projection fused.
# ---------------------------------------------------------------------------
def _mha_kernel(x_ref, mask_ref, wqkv_ref, bqkv_ref, wp_ref, bp_ref, o_ref, *,
                n_heads, approx_recip):
    Bb, T, C = x_ref.shape
    cdt = x_ref.dtype
    hs = C // n_heads

    # ---- fused QKV for all heads & all packed rows: one lane-dense matmul ---
    # 1/sqrt(hs) is already folded into the Q weights/bias (fuse_params).
    x2 = x_ref[...].reshape(Bb * T, C)
    qkv = jnp.dot(x2, wqkv_ref[...],
                  preferred_element_type=jnp.float32) + bqkv_ref[...]  # f32

    neg = mask_ref[...]   # (T, T) additive causal mask, f32, VMEM-resident
    wp = wp_ref[...]      # (C, C) compute dtype
    bp = bp_ref[...]      # (1, C) f32

    for b in range(Bb):
        r0 = b * T
        ctxs = []
        # TODO(synk): convert to lax.fori_loop / q-tiling for T >= ~512 to
        # bound live (T,T) f32 temporaries; fine for block_size=256.
        for h in range(n_heads):
            lo = h * hs
            q = qkv[r0:r0 + T, lo:lo + hs].astype(cdt)              # (T, hs)
            k = qkv[r0:r0 + T, C + lo:C + lo + hs].astype(cdt)
            v = qkv[r0:r0 + T, 2 * C + lo:2 * C + lo + hs].astype(cdt)

            # scores (already scaled); MXU contracts the transposed operand
            # directly (no materialized transpose).
            s = jax.lax.dot_general(q, k, (((1,), (1,)), ((), ())),
                                    preferred_element_type=jnp.float32)
            s = s + neg                                             # causal mask

            m = jnp.max(s, axis=-1, keepdims=True)
            e = jnp.exp(s - m)
            p = e * pl.reciprocal(jnp.sum(e, axis=-1, keepdims=True),
                                  approx=approx_recip)              # softmax f32

            ctxs.append(jnp.dot(p.astype(cdt), v,
                                preferred_element_type=jnp.float32).astype(cdt))

        # lane-concat the 8 (T, hs) context slices -> one (T, C) tile, then a
        # single full-depth output projection (replaces 8 K=16 matmuls).
        ctx = jnp.concatenate(ctxs, axis=-1)                        # (T, C)
        out = jnp.dot(ctx, wp, preferred_element_type=jnp.float32) + bp
        o_ref[b] = out.astype(o_ref.dtype)                          # lane-dense


def _pick_batch_block(B, T):
    """Pack several batch elements per grid step when T is small (amortizes
    per-step pipeline overhead, raises MXU fill of the fused QKV matmul)."""
    if T % 8 != 0:
        return 1
    cap = min(B, max(1, 256 // T))
    for cand in range(cap, 0, -1):
        if B % cand == 0:
            return cand
    return 1


def _causal_additive_mask(T):
    row = jax.lax.broadcasted_iota(jnp.int32, (T, T), 0)
    col = jax.lax.broadcasted_iota(jnp.int32, (T, T), 1)
    return jnp.where(row >= col, 0.0, -1e12).astype(jnp.float32)


def _fused_mha(x, mask, wqkv, bqkv, wp, bp, *, n_heads, approx_recip, out_dtype):
    """x: (B,T,C); mask: (T,T); wqkv: (C,3C); bqkv: (1,3C); wp: (C,C); bp: (1,C)."""
    B, T, C = x.shape
    Bb = _pick_batch_block(B, T)
    kernel = functools.partial(_mha_kernel, n_heads=n_heads,
                               approx_recip=approx_recip)
    return pl.pallas_call(
        kernel,
        out_shape=jax.ShapeDtypeStruct((B, T, C), out_dtype),
        grid_spec=pltpu.PrefetchScalarGridSpec(
            num_scalar_prefetch=0,
            grid=(B // Bb,),                                   # heads fused inside
            in_specs=[
                pl.BlockSpec((Bb, T, C), lambda g: (g, 0, 0)),        # x
                pl.BlockSpec((T, T), lambda g: (0, 0)),               # additive mask
                pl.BlockSpec((C, 3 * C), lambda g: (0, 0)),           # Wqkv (scaled Q)
                pl.BlockSpec((1, 3 * C), lambda g: (0, 0)),           # bqkv
                pl.BlockSpec((C, C), lambda g: (0, 0)),               # Wp
                pl.BlockSpec((1, C), lambda g: (0, 0)),               # bp
            ],
            out_specs=pl.BlockSpec((Bb, T, C), lambda g: (g, 0, 0)),
        ),
        # "parallel" batch axis keeps both v7x TensorCores fed when B//Bb >= 2.
        # VMEM at T<=block_size=256 (Bb=1): ~1.2 MiB of double-buffered blocks
        # plus ~1-2 MiB of in-kernel temporaries -- inside v7x's 32 MiB scoped
        # default; larger T needs q-tiling (see TODO above).
        compiler_params=pltpu.CompilerParams(
            dimension_semantics=("parallel",)),
    )(x, mask, wqkv, bqkv, wp, bp)


# ---------------------------------------------------------------------------
# One-time parameter prep + forward wrapper (no per-call transposes / casts)
# ---------------------------------------------------------------------------
def fuse_params(params, compute_dtype=jnp.bfloat16):
    """Fuse per-head PyTorch-layout (out,in) weights into (C, 3*H*hs), fold the
    1/sqrt(head_size) score scale into Wq/bq (exact: 0.25 is a power of two),
    and pre-transpose the projection — all ONCE at init."""
    inv_sqrt_hs = 1.0 / math.sqrt(HEAD_SIZE)

    def stack(w):                                   # (H, hs, C) -> (C, H*hs)
        H, hs, C = w.shape
        return jnp.transpose(w, (2, 0, 1)).reshape(C, H * hs)

    wq = stack(params["Wq"]) * inv_sqrt_hs
    wqkv = jnp.concatenate(
        [wq, stack(params["Wk"]), stack(params["Wv"])],
        axis=1).astype(compute_dtype)                              # (C, 3*H*hs)
    bq = params["bq"].reshape(-1) * inv_sqrt_hs
    bqkv = jnp.concatenate(
        [bq, params["bk"].reshape(-1),
         params["bv"].reshape(-1)])[None, :].astype(jnp.float32)   # (1, 3*H*hs)
    wp = jnp.transpose(params["Wp"], (1, 0)).astype(compute_dtype)  # (H*hs, C)
    bp = params["bp"][None, :].astype(jnp.float32)                  # (1, C)
    return {"wqkv": wqkv, "bqkv": bqkv, "wp": wp, "bp": bp}


def multi_head_attention(x, fused, *, approx_reciprocal=True,
                         out_dtype=jnp.float32):
    """x: (B, T, n_embd) f32 -> (B, T, n_embd) out_dtype.
    Matmul precision follows the dtype of the fused weights (bf16 default);
    mask/softmax math is always f32."""
    cdt = fused["wqkv"].dtype
    T = x.shape[1]
    mask = _causal_additive_mask(T)
    return _fused_mha(x.astype(cdt), mask, fused["wqkv"], fused["bqkv"],
                      fused["wp"], fused["bp"],
                      n_heads=N_HEADS, approx_recip=approx_reciprocal,
                      out_dtype=out_dtype)


# ---------------------------------------------------------------------------
# Pure-JAX reference of the PyTorch forward (for correctness check)
# ---------------------------------------------------------------------------
def _reference(x, params):
    B, T, C = x.shape
    outs = []
    for h in range(N_HEADS):
        q = x @ params["Wq"][h].T + params["bq"][h]
        k = x @ params["Wk"][h].T + params["bk"][h]
        v = x @ params["Wv"][h].T + params["bv"][h]
        scores = (q @ jnp.swapaxes(k, -1, -2)) / (HEAD_SIZE ** 0.5)
        tril = jnp.tril(jnp.ones((T, T), jnp.float32))
        scores = scores * tril - 1e12 * (1.0 - tril)
        attn = jax.nn.softmax(scores, axis=-1)
        outs.append(attn @ v)
    cat = jnp.concatenate(outs, axis=-1)
    return cat @ params["Wp"].T + params["bp"]


def init_params(key):
    ks = jax.random.split(key, 8)
    scale_in = 1.0 / math.sqrt(N_EMBD)
    scale_cat = 1.0 / math.sqrt(N_HEADS * HEAD_SIZE)
    return {
        # per-head Linear weights, PyTorch convention (out_features, in_features)
        "Wq": jax.random.uniform(ks[0], (N_HEADS, HEAD_SIZE, N_EMBD),
                                 jnp.float32, -scale_in, scale_in),
        "Wk": jax.random.uniform(ks[1], (N_HEADS, HEAD_SIZE, N_EMBD),
                                 jnp.float32, -scale_in, scale_in),
        "Wv": jax.random.uniform(ks[2], (N_HEADS, HEAD_SIZE, N_EMBD),
                                 jnp.float32, -scale_in, scale_in),
        "bq": jax.random.uniform(ks[3], (N_HEADS, HEAD_SIZE),
                                 jnp.float32, -scale_in, scale_in),
        "bk": jax.random.uniform(ks[4], (N_HEADS, HEAD_SIZE),
                                 jnp.float32, -scale_in, scale_in),
        "bv": jax.random.uniform(ks[5], (N_HEADS, HEAD_SIZE),
                                 jnp.float32, -scale_in, scale_in),
        "Wp": jax.random.uniform(ks[6], (N_EMBD, N_HEADS * HEAD_SIZE),
                                 jnp.float32, -scale_cat, scale_cat),
        "bp": jax.random.uniform(ks[7], (N_EMBD,),
                                 jnp.float32, -scale_cat, scale_cat),
    }


if __name__ == "__main__":
    key = jax.random.PRNGKey(0)
    k_x, k_p = jax.random.split(key)

    B, T = 2, 16  # small seq (<= block_size=256), n_embd fixed at 128
    x = jax.random.normal(k_x, (B, T, N_EMBD), jnp.float32)
    params = init_params(k_p)
    ref = _reference(x, params)

    # exact-precision path (f32 matmuls, exact reciprocal): strict check
    fused_f32 = fuse_params(params, compute_dtype=jnp.float32)
    out_f32 = jax.block_until_ready(
        multi_head_attention(x, fused_f32, approx_reciprocal=False))
    assert out_f32.shape == (B, T, N_EMBD)
    assert jnp.allclose(out_f32, ref, atol=1e-4, rtol=1e-4), "f32 path mismatch"

    # fast path (bf16 MXU operands + approx reciprocal): looser tolerance
    fused_bf16 = fuse_params(params, compute_dtype=jnp.bfloat16)
    out_fast = jax.block_until_ready(multi_head_attention(x, fused_bf16))
    assert out_fast.shape == (B, T, N_EMBD)
    assert jnp.allclose(out_fast, ref, atol=5e-2, rtol=5e-2), "bf16 path mismatch"

    print("KERNEL_OK")
</pallas_src>

<mosaic_0001>
module attributes {stable_mosaic.version = 11 : i64} {
  func.func @_mha_kernel(%arg0: i32, %arg1: memref<2x16x128xf32, #tpu.memory_space<vmem>>, %arg2: memref<16x16xf32, #tpu.memory_space<vmem>>, %arg3: memref<128x384xf32, #tpu.memory_space<vmem>>, %arg4: memref<1x384xf32, #tpu.memory_space<vmem>>, %arg5: memref<128x128xf32, #tpu.memory_space<vmem>>, %arg6: memref<1x128xf32, #tpu.memory_space<vmem>>, %arg7: memref<2x16x128xf32, #tpu.memory_space<vmem>>) attributes {dimension_semantics = [#tpu.dimension_semantics<parallel>], iteration_bounds = array<i64: 1>, scalar_prefetch = 0 : i64, scratch_operands = 0 : i64, tpu.core_type = #tpu.core_type<tc>, window_params = [{transform_indices = @transform_0, window_bounds = array<i64: 2, 16, 128>}, {pipeline_mode = #tpu.pipeline_mode<synchronous>, transform_indices = @transform_1, window_bounds = array<i64: 16, 16>}, {pipeline_mode = #tpu.pipeline_mode<synchronous>, transform_indices = @transform_2, window_bounds = array<i64: 128, 384>}, {pipeline_mode = #tpu.pipeline_mode<synchronous>, transform_indices = @transform_3, window_bounds = array<i64: 1, 384>}, {pipeline_mode = #tpu.pipeline_mode<synchronous>, transform_indices = @transform_4, window_bounds = array<i64: 128, 128>}, {pipeline_mode = #tpu.pipeline_mode<synchronous>, transform_indices = @transform_5, window_bounds = array<i64: 1, 128>}, {transform_indices = @transform_6, window_bounds = array<i64: 2, 16, 128>}]} {
    %c0 = arith.constant 0 : index
    %c0_0 = arith.constant 0 : index
    %c0_1 = arith.constant 0 : index
    %0 = vector.load %arg1[%c0, %c0_0, %c0_1] : memref<2x16x128xf32, #tpu.memory_space<vmem>>, vector<2x16x128xf32>
    %1 = vector.shape_cast %0 : vector<2x16x128xf32> to vector<32x128xf32>
    %c0_2 = arith.constant 0 : index
    %c0_3 = arith.constant 0 : index
    %2 = vector.load %arg3[%c0_2, %c0_3] : memref<128x384xf32, #tpu.memory_space<vmem>>, vector<128x384xf32>
    %cst = arith.constant dense<0.000000e+00> : vector<32x384xf32>
    %3 = tpu.matmul %1, %2, %cst {dimension_numbers = #tpu.dot_dimension_numbers<[1], [0], [0], [1], [0, 0, 1, 1], [], []>} : vector<32x128xf32>, vector<128x384xf32>, vector<32x384xf32> -> vector<32x384xf32>
    %c0_4 = arith.constant 0 : index
    %c0_5 = arith.constant 0 : index
    %4 = vector.load %arg4[%c0_4, %c0_5] : memref<1x384xf32, #tpu.memory_space<vmem>>, vector<1x384xf32>
    %5 = vector.broadcast %4 : vector<1x384xf32> to vector<32x384xf32>
    %6 = arith.addf %3, %5 : vector<32x384xf32>
    %c0_6 = arith.constant 0 : index
    %c0_7 = arith.constant 0 : index
    %7 = vector.load %arg2[%c0_6, %c0_7] : memref<16x16xf32, #tpu.memory_space<vmem>>, vector<16x16xf32>
    %c0_8 = arith.constant 0 : index
    %c0_9 = arith.constant 0 : index
    %8 = vector.load %arg5[%c0_8, %c0_9] : memref<128x128xf32, #tpu.memory_space<vmem>>, vector<128x128xf32>
    %c0_10 = arith.constant 0 : index
    %c0_11 = arith.constant 0 : index
    %9 = vector.load %arg6[%c0_10, %c0_11] : memref<1x128xf32, #tpu.memory_space<vmem>>, vector<1x128xf32>
    %10 = vector.extract_strided_slice %6 {offsets = [0, 0], sizes = [16, 16], strides = [1, 1]} : vector<32x384xf32> to vector<16x16xf32>
    %11 = vector.extract_strided_slice %6 {offsets = [0, 128], sizes = [16, 16], strides = [1, 1]} : vector<32x384xf32> to vector<16x16xf32>
    %12 = vector.extract_strided_slice %6 {offsets = [0, 256], sizes = [16, 16], strides = [1, 1]} : vector<32x384xf32> to vector<16x16xf32>
    %cst_12 = arith.constant dense<0.000000e+00> : vector<16x16xf32>
    %13 = tpu.matmul %10, %11, %cst_12 {dimension_numbers = #tpu.dot_dimension_numbers<[1], [1], [0], [0], [0, 0, 1, 0], [], []>} : vector<16x16xf32>, vector<16x16xf32>, vector<16x16xf32> -> vector<16x16xf32>
    %14 = arith.addf %13, %7 : vector<16x16xf32>
    %cst_13 = arith.constant dense<0xFF800000> : vector<16xf32>
    %15 = vector.multi_reduction <maximumf>, %14, %cst_13 [1] : vector<16x16xf32> to vector<16xf32>
    %16 = vector.shape_cast %15 : vector<16xf32> to vector<16x1xf32>
    %17 = vector.broadcast %16 : vector<16x1xf32> to vector<16x16xf32>
    %18 = arith.subf %14, %17 : vector<16x16xf32>
    %19 = math.exp %18 : vector<16x16xf32>
    %cst_14 = arith.constant dense<0.000000e+00> : vector<16xf32>
    %20 = vector.multi_reduction <add>, %19, %cst_14 [1] : vector<16x16xf32> to vector<16xf32>
    %21 = vector.shape_cast %20 : vector<16xf32> to vector<16x1xf32>
    %22 = tpu.reciprocal %21 : vector<16x1xf32> -> vector<16x1xf32>
    %23 = vector.broadcast %22 : vector<16x1xf32> to vector<16x16xf32>
    %24 = arith.mulf %19, %23 : vector<16x16xf32>
    %cst_15 = arith.constant dense<0.000000e+00> : vector<16x16xf32>
    %25 = tpu.matmul %24, %12, %cst_15 {dimension_numbers = #tpu.dot_dimension_numbers<[1], [0], [0], [1], [0, 0, 1, 1], [], []>} : vector<16x16xf32>, vector<16x16xf32>, vector<16x16xf32> -> vector<16x16xf32>
    %26 = vector.extract_strided_slice %6 {offsets = [0, 16], sizes = [16, 16], strides = [1, 1]} : vector<32x384xf32> to vector<16x16xf32>
    %27 = vector.extract_strided_slice %6 {offsets = [0, 144], sizes = [16, 16], strides = [1, 1]} : vector<32x384xf32> to vector<16x16xf32>
    %28 = vector.extract_strided_slice %6 {offsets = [0, 272], sizes = [16, 16], strides = [1, 1]} : vector<32x384xf32> to vector<16x16xf32>
    %cst_16 = arith.constant dense<0.000000e+00> : vector<16x16xf32>
    %29 = tpu.matmul %26, %27, %cst_16 {dimension_numbers = #tpu.dot_dimension_numbers<[1], [1], [0], [0], [0, 0, 1, 0], [], []>} : vector<16x16xf32>, vector<16x16xf32>, vector<16x16xf32> -> vector<16x16xf32>
    %30 = arith.addf %29, %7 : vector<16x16xf32>
    %cst_17 = arith.constant dense<0xFF800000> : vector<16xf32>
    %31 = vector.multi_reduction <maximumf>, %30, %cst_17 [1] : vector<16x16xf32> to vector<16xf32>
    %32 = vector.shape_cast %31 : vector<16xf32> to vector<16x1xf32>
    %33 = vector.broadcast %32 : vector<16x1xf32> to vector<16x16xf32>
    %34 = arith.subf %30, %33 : vector<16x16xf32>
    %35 = math.exp %34 : vector<16x16xf32>
    %cst_18 = arith.constant dense<0.000000e+00> : vector<16xf32>
    %36 = vector.multi_reduction <add>, %35, %cst_18 [1] : vector<16x16xf32> to vector<16xf32>
    %37 = vector.shape_cast %36 : vector<16xf32> to vector<16x1xf32>
    %38 = tpu.reciprocal %37 : vector<16x1xf32> -> vector<16x1xf32>
    %39 = vector.broadcast %38 : vector<16x1xf32> to vector<16x16xf32>
    %40 = arith.mulf %35, %39 : vector<16x16xf32>
    %cst_19 = arith.constant dense<0.000000e+00> : vector<16x16xf32>
    %41 = tpu.matmul %40, %28, %cst_19 {dimension_numbers = #tpu.dot_dimension_numbers<[1], [0], [0], [1], [0, 0, 1, 1], [], []>} : vector<16x16xf32>, vector<16x16xf32>, vector<16x16xf32> -> vector<16x16xf32>
    %42 = vector.extract_strided_slice %6 {offsets = [0, 32], sizes = [16, 16], strides = [1, 1]} : vector<32x384xf32> to vector<16x16xf32>
    %43 = vector.extract_strided_slice %6 {offsets = [0, 160], sizes = [16, 16], strides = [1, 1]} : vector<32x384xf32> to vector<16x16xf32>
    %44 = vector.extract_strided_slice %6 {offsets = [0, 288], sizes = [16, 16], strides = [1, 1]} : vector<32x384xf32> to vector<16x16xf32>
    %cst_20 = arith.constant dense<0.000000e+00> : vector<16x16xf32>
    %45 = tpu.matmul %42, %43, %cst_20 {dimension_numbers = #tpu.dot_dimension_numbers<[1], [1], [0], [0], [0, 0, 1, 0], [], []>} : vector<16x16xf32>, vector<16x16xf32>, vector<16x16xf32> -> vector<16x16xf32>
    %46 = arith.addf %45, %7 : vector<16x16xf32>
    %cst_21 = arith.constant dense<0xFF800000> : vector<16xf32>
    %47 = vector.multi_reduction <maximumf>, %46, %cst_21 [1] : vector<16x16xf32> to vector<16xf32>
    %48 = vector.shape_cast %47 : vector<16xf32> to vector<16x1xf32>
    %49 = vector.broadcast %48 : vector<16x1xf32> to vector<16x16xf32>
    %50 = arith.subf %46, %49 : vector<16x16xf32>
    %51 = math.exp %50 : vector<16x16xf32>
    %cst_22 = arith.constant dense<0.000000e+00> : vector<16xf32>
    %52 = vector.multi_reduction <add>, %51, %cst_22 [1] : vector<16x16xf32> to vector<16xf32>
    %53 = vector.shape_cast %52 : vector<16xf32> to vector<16x1xf32>
    %54 = tpu.reciprocal %53 : vector<16x1xf32> -> vector<16x1xf32>
    %55 = vector.broadcast %54 : vector<16x1xf32> to vector<16x16xf32>
    %56 = arith.mulf %51, %55 : vector<16x16xf32>
    %cst_23 = arith.constant dense<0.000000e+00> : vector<16x16xf32>
    %57 = tpu.matmul %56, %44, %cst_23 {dimension_numbers = #tpu.dot_dimension_numbers<[1], [0], [0], [1], [0, 0, 1, 1], [], []>} : vector<16x16xf32>, vector<16x16xf32>, vector<16x16xf32> -> vector<16x16xf32>
    %58 = vector.extract_strided_slice %6 {offsets = [0, 48], sizes = [16, 16], strides = [1, 1]} : vector<32x384xf32> to vector<16x16xf32>
    %59 = vector.extract_strided_slice %6 {offsets = [0, 176], sizes = [16, 16], strides = [1, 1]} : vector<32x384xf32> to vector<16x16xf32>
    %60 = vector.extract_strided_slice %6 {offsets = [0, 304], sizes = [16, 16], strides = [1, 1]} : vector<32x384xf32> to vector<16x16xf32>
    %cst_24 = arith.constant dense<0.000000e+00> : vector<16x16xf32>
    %61 = tpu.matmul %58, %59, %cst_24 {dimension_numbers = #tpu.dot_dimension_numbers<[1], [1], [0], [0], [0, 0, 1, 0], [], []>} : vector<16x16xf32>, vector<16x16xf32>, vector<16x16xf32> -> vector<16x16xf32>
    %62 = arith.addf %61, %7 : vector<16x16xf32>
    %cst_25 = arith.constant dense<0xFF800000> : vector<16xf32>
    %63 = vector.multi_reduction <maximumf>, %62, %cst_25 [1] : vector<16x16xf32> to vector<16xf32>
    %64 = vector.shape_cast %63 : vector<16xf32> to vector<16x1xf32>
    %65 = vector.broadcast %64 : vector<16x1xf32> to vector<16x16xf32>
    %66 = arith.subf %62, %65 : vector<16x16xf32>
    %67 = math.exp %66 : vector<16x16xf32>
    %cst_26 = arith.constant dense<0.000000e+00> : vector<16xf32>
    %68 = vector.multi_reduction <add>, %67, %cst_26 [1] : vector<16x16xf32> to vector<16xf32>
    %69 = vector.shape_cast %68 : vector<16xf32> to vector<16x1xf32>
    %70 = tpu.reciprocal %69 : vector<16x1xf32> -> vector<16x1xf32>
    %71 = vector.broadcast %70 : vector<16x1xf32> to vector<16x16xf32>
    %72 = arith.mulf %67, %71 : vector<16x16xf32>
    %cst_27 = arith.constant dense<0.000000e+00> : vector<16x16xf32>
    %73 = tpu.matmul %72, %60, %cst_27 {dimension_numbers = #tpu.dot_dimension_numbers<[1], [0], [0], [1], [0, 0, 1, 1], [], []>} : vector<16x16xf32>, vector<16x16xf32>, vector<16x16xf32> -> vector<16x16xf32>
    %74 = vector.extract_strided_slice %6 {offsets = [0, 64], sizes = [16, 16], strides = [1, 1]} : vector<32x384xf32> to vector<16x16xf32>
    %75 = vector.extract_strided_slice %6 {offsets = [0, 192], sizes = [16, 16], strides = [1, 1]} : vector<32x384xf32> to vector<16x16xf32>
    %76 = vector.extract_strided_slice %6 {offsets = [0, 320], sizes = [16, 16], strides = [1, 1]} : vector<32x384xf32> to vector<16x16xf32>
    %cst_28 = arith.constant dense<0.000000e+00> : vector<16x16xf32>
    %77 = tpu.matmul %74, %75, %cst_28 {dimension_numbers = #tpu.dot_dimension_numbers<[1], [1], [0], [0], [0, 0, 1, 0], [], []>} : vector<16x16xf32>, vector<16x16xf32>, vector<16x16xf32> -> vector<16x16xf32>
    %78 = arith.addf %77, %7 : vector<16x16xf32>
    %cst_29 = arith.constant dense<0xFF800000> : vector<16xf32>
    %79 = vector.multi_reduction <maximumf>, %78, %cst_29 [1] : vector<16x16xf32> to vector<16xf32>
    %80 = vector.shape_cast %79 : vector<16xf32> to vector<16x1xf32>
    %81 = vector.broadcast %80 : vector<16x1xf32> to vector<16x16xf32>
    %82 = arith.subf %78, %81 : vector<16x16xf32>
    %83 = math.exp %82 : vector<16x16xf32>
    %cst_30 = arith.constant dense<0.000000e+00> : vector<16xf32>
    %84 = vector.multi_reduction <add>, %83, %cst_30 [1] : vector<16x16xf32> to vector<16xf32>
    %85 = vector.shape_cast %84 : vector<16xf32> to vector<16x1xf32>
    %86 = tpu.reciprocal %85 : vector<16x1xf32> -> vector<16x1xf32>
    %87 = vector.broadcast %86 : vector<16x1xf32> to vector<16x16xf32>
    %88 = arith.mulf %83, %87 : vector<16x16xf32>
    %cst_31 = arith.constant dense<0.000000e+00> : vector<16x16xf32>
    %89 = tpu.matmul %88, %76, %cst_31 {dimension_numbers = #tpu.dot_dimension_numbers<[1], [0], [0], [1], [0, 0, 1, 1], [], []>} : vector<16x16xf32>, vector<16x16xf32>, vector<16x16xf32> -> vector<16x16xf32>
    %90 = vector.extract_strided_slice %6 {offsets = [0, 80], sizes = [16, 16], strides = [1, 1]} : vector<32x384xf32> to vector<16x16xf32>
    %91 = vector.extract_strided_slice %6 {offsets = [0, 208], sizes = [16, 16], strides = [1, 1]} : vector<32x384xf32> to vector<16x16xf32>
    %92 = vector.extract_strided_slice %6 {offsets = [0, 336], sizes = [16, 16], strides = [1, 1]} : vector<32x384xf32> to vector<16x16xf32>
    %cst_32 = arith.constant dense<0.000000e+00> : vector<16x16xf32>
    %93 = tpu.matmul %90, %91, %cst_32 {dimension_numbers = #tpu.dot_dimension_numbers<[1], [1], [0], [0], [0, 0, 1, 0], [], []>} : vector<16x16xf32>, vector<16x16xf32>, vector<16x16xf32> -> vector<16x16xf32>
    %94 = arith.addf %93, %7 : vector<16x16xf32>
    %cst_33 = arith.constant dense<0xFF800000> : vector<16xf32>
    %95 = vector.multi_reduction <maximumf>, %94, %cst_33 [1] : vector<16x16xf32> to vector<16xf32>
    %96 = vector.shape_cast %95 : vector<16xf32> to vector<16x1xf32>
    %97 = vector.broadcast %96 : vector<16x1xf32> to vector<16x16xf32>
    %98 = arith.subf %94, %97 : vector<16x16xf32>
    %99 = math.exp %98 : vector<16x16xf32>
    %cst_34 = arith.constant dense<0.000000e+00> : vector<16xf32>
    %100 = vector.multi_reduction <add>, %99, %cst_34 [1] : vector<16x16xf32> to vector<16xf32>
    %101 = vector.shape_cast %100 : vector<16xf32> to vector<16x1xf32>
    %102 = tpu.reciprocal %101 : vector<16x1xf32> -> vector<16x1xf32>
    %103 = vector.broadcast %102 : vector<16x1xf32> to vector<16x16xf32>
    %104 = arith.mulf %99, %103 : vector<16x16xf32>
    %cst_35 = arith.constant dense<0.000000e+00> : vector<16x16xf32>
    %105 = tpu.matmul %104, %92, %cst_35 {dimension_numbers = #tpu.dot_dimension_numbers<[1], [0], [0], [1], [0, 0, 1, 1], [], []>} : vector<16x16xf32>, vector<16x16xf32>, vector<16x16xf32> -> vector<16x16xf32>
    %106 = vector.extract_strided_slice %6 {offsets = [0, 96], sizes = [16, 16], strides = [1, 1]} : vector<32x384xf32> to vector<16x16xf32>
    %107 = vector.extract_strided_slice %6 {offsets = [0, 224], sizes = [16, 16], strides = [1, 1]} : vector<32x384xf32> to vector<16x16xf32>
    %108 = vector.extract_strided_slice %6 {offsets = [0, 352], sizes = [16, 16], strides = [1, 1]} : vector<32x384xf32> to vector<16x16xf32>
    %cst_36 = arith.constant dense<0.000000e+00> : vector<16x16xf32>
    %109 = tpu.matmul %106, %107, %cst_36 {dimension_numbers = #tpu.dot_dimension_numbers<[1], [1], [0], [0], [0, 0, 1, 0], [], []>} : vector<16x16xf32>, vector<16x16xf32>, vector<16x16xf32> -> vector<16x16xf32>
    %110 = arith.addf %109, %7 : vector<16x16xf32>
    %cst_37 = arith.constant dense<0xFF800000> : vector<16xf32>
    %111 = vector.multi_reduction <maximumf>, %110, %cst_37 [1] : vector<16x16xf32> to vector<16xf32>
    %112 = vector.shape_cast %111 : vector<16xf32> to vector<16x1xf32>
    %113 = vector.broadcast %112 : vector<16x1xf32> to vector<16x16xf32>
    %114 = arith.subf %110, %113 : vector<16x16xf32>
    %115 = math.exp %114 : vector<16x16xf32>
    %cst_38 = arith.constant dense<0.000000e+00> : vector<16xf32>
    %116 = vector.multi_reduction <add>, %115, %cst_38 [1] : vector<16x16xf32> to vector<16xf32>
    %117 = vector.shape_cast %116 : vector<16xf32> to vector<16x1xf32>
    %118 = tpu.reciprocal %117 : vector<16x1xf32> -> vector<16x1xf32>
    %119 = vector.broadcast %118 : vector<16x1xf32> to vector<16x16xf32>
    %120 = arith.mulf %115, %119 : vector<16x16xf32>
    %cst_39 = arith.constant dense<0.000000e+00> : vector<16x16xf32>
    %121 = tpu.matmul %120, %108, %cst_39 {dimension_numbers = #tpu.dot_dimension_numbers<[1], [0], [0], [1], [0, 0, 1, 1], [], []>} : vector<16x16xf32>, vector<16x16xf32>, vector<16x16xf32> -> vector<16x16xf32>
    %122 = vector.extract_strided_slice %6 {offsets = [0, 112], sizes = [16, 16], strides = [1, 1]} : vector<32x384xf32> to vector<16x16xf32>
    %123 = vector.extract_strided_slice %6 {offsets = [0, 240], sizes = [16, 16], strides = [1, 1]} : vector<32x384xf32> to vector<16x16xf32>
    %124 = vector.extract_strided_slice %6 {offsets = [0, 368], sizes = [16, 16], strides = [1, 1]} : vector<32x384xf32> to vector<16x16xf32>
    %cst_40 = arith.constant dense<0.000000e+00> : vector<16x16xf32>
    %125 = tpu.matmul %122, %123, %cst_40 {dimension_numbers = #tpu.dot_dimension_numbers<[1], [1], [0], [0], [0, 0, 1, 0], [], []>} : vector<16x16xf32>, vector<16x16xf32>, vector<16x16xf32> -> vector<16x16xf32>
    %126 = arith.addf %125, %7 : vector<16x16xf32>
    %cst_41 = arith.constant dense<0xFF800000> : vector<16xf32>
    %127 = vector.multi_reduction <maximumf>, %126, %cst_41 [1] : vector<16x16xf32> to vector<16xf32>
    %128 = vector.shape_cast %127 : vector<16xf32> to vector<16x1xf32>
    %129 = vector.broadcast %128 : vector<16x1xf32> to vector<16x16xf32>
    %130 = arith.subf %126, %129 : vector<16x16xf32>
    %131 = math.exp %130 : vector<16x16xf32>
    %cst_42 = arith.constant dense<0.000000e+00> : vector<16xf32>
    %132 = vector.multi_reduction <add>, %131, %cst_42 [1] : vector<16x16xf32> to vector<16xf32>
    %133 = vector.shape_cast %132 : vector<16xf32> to vector<16x1xf32>
    %134 = tpu.reciprocal %133 : vector<16x1xf32> -> vector<16x1xf32>
    %135 = vector.broadcast %134 : vector<16x1xf32> to vector<16x16xf32>
    %136 = arith.mulf %131, %135 : vector<16x16xf32>
    %cst_43 = arith.constant dense<0.000000e+00> : vector<16x16xf32>
    %137 = tpu.matmul %136, %124, %cst_43 {dimension_numbers = #tpu.dot_dimension_numbers<[1], [0], [0], [1], [0, 0, 1, 1], [], []>} : vector<16x16xf32>, vector<16x16xf32>, vector<16x16xf32> -> vector<16x16xf32>
    %138 = tpu.concatenate %25, %41, %57, %73, %89, %105, %121, %137 in 1 : vector<16x16xf32>, vector<16x16xf32>, vector<16x16xf32>, vector<16x16xf32>, vector<16x16xf32>, vector<16x16xf32>, vector<16x16xf32>, vector<16x16xf32> -> vector<16x128xf32>
    %cst_44 = arith.constant dense<0.000000e+00> : vector<16x128xf32>
    %139 = tpu.matmul %138, %8, %cst_44 {dimension_numbers = #tpu.dot_dimension_numbers<[1], [0], [0], [1], [0, 0, 1, 1], [], []>} : vector<16x128xf32>, vector<128x128xf32>, vector<16x128xf32> -> vector<16x128xf32>
    %140 = vector.broadcast %9 : vector<1x128xf32> to vector<16x128xf32>
    %141 = arith.addf %139, %140 : vector<16x128xf32>
    %c0_45 = arith.constant 0 : index
    %c0_46 = arith.constant 0 : index
    %c0_47 = arith.constant 0 : index
    %142 = vector.load %arg7[%c0_45, %c0_46, %c0_47] : memref<2x16x128xf32, #tpu.memory_space<vmem>>, vector<1x16x128xf32>
    %143 = vector.shape_cast %142 : vector<1x16x128xf32> to vector<16x128xf32>
    %144 = vector.shape_cast %141 : vector<16x128xf32> to vector<1x16x128xf32>
    tpu.vector_store %arg7[%c0_45, %c0_46, %c0_47], %144 {strides = array<i32>} : memref<2x16x128xf32, #tpu.memory_space<vmem>>, vector<1x16x128xf32>,
    %145 = vector.extract_strided_slice %6 {offsets = [16, 0], sizes = [16, 16], strides = [1, 1]} : vector<32x384xf32> to vector<16x16xf32>
    %146 = vector.extract_strided_slice %6 {offsets = [16, 128], sizes = [16, 16], strides = [1, 1]} : vector<32x384xf32> to vector<16x16xf32>
    %147 = vector.extract_strided_slice %6 {offsets = [16, 256], sizes = [16, 16], strides = [1, 1]} : vector<32x384xf32> to vector<16x16xf32>
    %cst_48 = arith.constant dense<0.000000e+00> : vector<16x16xf32>
    %148 = tpu.matmul %145, %146, %cst_48 {dimension_numbers = #tpu.dot_dimension_numbers<[1], [1], [0], [0], [0, 0, 1, 0], [], []>} : vector<16x16xf32>, vector<16x16xf32>, vector<16x16xf32> -> vector<16x16xf32>
    %149 = arith.addf %148, %7 : vector<16x16xf32>
    %cst_49 = arith.constant dense<0xFF800000> : vector<16xf32>
    %150 = vector.multi_reduction <maximumf>, %149, %cst_49 [1] : vector<16x16xf32> to vector<16xf32>
    %151 = vector.shape_cast %150 : vector<16xf32> to vector<16x1xf32>
    %152 = vector.broadcast %151 : vector<16x1xf32> to vector<16x16xf32>
    %153 = arith.subf %149, %152 : vector<16x16xf32>
    %154 = math.exp %153 : vector<16x16xf32>
    %cst_50 = arith.constant dense<0.000000e+00> : vector<16xf32>
    %155 = vector.multi_reduction <add>, %154, %cst_50 [1] : vector<16x16xf32> to vector<16xf32>
    %156 = vector.shape_cast %155 : vector<16xf32> to vector<16x1xf32>
    %157 = tpu.reciprocal %156 : vector<16x1xf32> -> vector<16x1xf32>
    %158 = vector.broadcast %157 : vector<16x1xf32> to vector<16x16xf32>
    %159 = arith.mulf %154, %158 : vector<16x16xf32>
    %cst_51 = arith.constant dense<0.000000e+00> : vector<16x16xf32>
    %160 = tpu.matmul %159, %147, %cst_51 {dimension_numbers = #tpu.dot_dimension_numbers<[1], [0], [0], [1], [0, 0, 1, 1], [], []>} : vector<16x16xf32>, vector<16x16xf32>, vector<16x16xf32> -> vector<16x16xf32>
    %161 = vector.extract_strided_slice %6 {offsets = [16, 16], sizes = [16, 16], strides = [1, 1]} : vector<32x384xf32> to vector<16x16xf32>
    %162 = vector.extract_strided_slice %6 {offsets = [16, 144], sizes = [16, 16], strides = [1, 1]} : vector<32x384xf32> to vector<16x16xf32>
    %163 = vector.extract_strided_slice %6 {offsets = [16, 272], sizes = [16, 16], strides = [1, 1]} : vector<32x384xf32> to vector<16x16xf32>
    %cst_52 = arith.constant dense<0.000000e+00> : vector<16x16xf32>
    %164 = tpu.matmul %161, %162, %cst_52 {dimension_numbers = #tpu.dot_dimension_numbers<[1], [1], [0], [0], [0, 0, 1, 0], [], []>} : vector<16x16xf32>, vector<16x16xf32>, vector<16x16xf32> -> vector<16x16xf32>
    %165 = arith.addf %164, %7 : vector<16x16xf32>
    %cst_53 = arith.constant dense<0xFF800000> : vector<16xf32>
    %166 = vector.multi_reduction <maximumf>, %165, %cst_53 [1] : vector<16x16xf32> to vector<16xf32>
    %167 = vector.shape_cast %166 : vector<16xf32> to vector<16x1xf32>
    %168 = vector.broadcast %167 : vector<16x1xf32> to vector<16x16xf32>
    %169 = arith.subf %165, %168 : vector<16x16xf32>
    %170 = math.exp %169 : vector<16x16xf32>
    %cst_54 = arith.constant dense<0.000000e+00> : vector<16xf32>
    %171 = vector.multi_reduction <add>, %170, %cst_54 [1] : vector<16x16xf32> to vector<16xf32>
    %172 = vector.shape_cast %171 : vector<16xf32> to vector<16x1xf32>
    %173 = tpu.reciprocal %172 : vector<16x1xf32> -> vector<16x1xf32>
    %174 = vector.broadcast %173 : vector<16x1xf32> to vector<16x16xf32>
    %175 = arith.mulf %170, %174 : vector<16x16xf32>
    %cst_55 = arith.constant dense<0.000000e+00> : vector<16x16xf32>
    %176 = tpu.matmul %175, %163, %cst_55 {dimension_numbers = #tpu.dot_dimension_numbers<[1], [0], [0], [1], [0, 0, 1, 1], [], []>} : vector<16x16xf32>, vector<16x16xf32>, vector<16x16xf32> -> vector<16x16xf32>
    %177 = vector.extract_strided_slice %6 {offsets = [16, 32], sizes = [16, 16], strides = [1, 1]} : vector<32x384xf32> to vector<16x16xf32>
    %178 = vector.extract_strided_slice %6 {offsets = [16, 160], sizes = [16, 16], strides = [1, 1]} : vector<32x384xf32> to vector<16x16xf32>
    %179 = vector.extract_strided_slice %6 {offsets = [16, 288], sizes = [16, 16], strides = [1, 1]} : vector<32x384xf32> to vector<16x16xf32>
    %cst_56 = arith.constant dense<0.000000e+00> : vector<16x16xf32>
    %180 = tpu.matmul %177, %178, %cst_56 {dimension_numbers = #tpu.dot_dimension_numbers<[1], [1], [0], [0], [0, 0, 1, 0], [], []>} : vector<16x16xf32>, vector<16x16xf32>, vector<16x16xf32> -> vector<16x16xf32>
    %181 = arith.addf %180, %7 : vector<16x16xf32>
    %cst_57 = arith.constant dense<0xFF800000> : vector<16xf32>
    %182 = vector.multi_reduction <maximumf>, %181, %cst_57 [1] : vector<16x16xf32> to vector<16xf32>
    %183 = vector.shape_cast %182 : vector<16xf32> to vector<16x1xf32>
    %184 = vector.broadcast %183 : vector<16x1xf32> to vector<16x16xf32>
    %185 = arith.subf %181, %184 : vector<16x16xf32>
    %186 = math.exp %185 : vector<16x16xf32>
    %cst_58 = arith.constant dense<0.000000e+00> : vector<16xf32>
    %187 = vector.multi_reduction <add>, %186, %cst_58 [1] : vector<16x16xf32> to vector<16xf32>
    %188 = vector.shape_cast %187 : vector<16xf32> to vector<16x1xf32>
    %189 = tpu.reciprocal %188 : vector<16x1xf32> -> vector<16x1xf32>
    %190 = vector.broadcast %189 : vector<16x1xf32> to vector<16x16xf32>
    %191 = arith.mulf %186, %190 : vector<16x16xf32>
    %cst_59 = arith.constant dense<0.000000e+00> : vector<16x16xf32>
    %192 = tpu.matmul %191, %179, %cst_59 {dimension_numbers = #tpu.dot_dimension_numbers<[1], [0], [0], [1], [0, 0, 1, 1], [], []>} : vector<16x16xf32>, vector<16x16xf32>, vector<16x16xf32> -> vector<16x16xf32>
    %193 = vector.extract_strided_slice %6 {offsets = [16, 48], sizes = [16, 16], strides = [1, 1]} : vector<32x384xf32> to vector<16x16xf32>
    %194 = vector.extract_strided_slice %6 {offsets = [16, 176], sizes = [16, 16], strides = [1, 1]} : vector<32x384xf32> to vector<16x16xf32>
    %195 = vector.extract_strided_slice %6 {offsets = [16, 304], sizes = [16, 16], strides = [1, 1]} : vector<32x384xf32> to vector<16x16xf32>
    %cst_60 = arith.constant dense<0.000000e+00> : vector<16x16xf32>
    %196 = tpu.matmul %193, %194, %cst_60 {dimension_numbers = #tpu.dot_dimension_numbers<[1], [1], [0], [0], [0, 0, 1, 0], [], []>} : vector<16x16xf32>, vector<16x16xf32>, vector<16x16xf32> -> vector<16x16xf32>
    %197 = arith.addf %196, %7 : vector<16x16xf32>
    %cst_61 = arith.constant dense<0xFF800000> : vector<16xf32>
    %198 = vector.multi_reduction <maximumf>, %197, %cst_61 [1] : vector<16x16xf32> to vector<16xf32>
    %199 = vector.shape_cast %198 : vector<16xf32> to vector<16x1xf32>
    %200 = vector.broadcast %199 : vector<16x1xf32> to vector<16x16xf32>
    %201 = arith.subf %197, %200 : vector<16x16xf32>
    %202 = math.exp %201 : vector<16x16xf32>
    %cst_62 = arith.constant dense<0.000000e+00> : vector<16xf32>
    %203 = vector.multi_reduction <add>, %202, %cst_62 [1] : vector<16x16xf32> to vector<16xf32>
    %204 = vector.shape_cast %203 : vector<16xf32> to vector<16x1xf32>
    %205 = tpu.reciprocal %204 : vector<16x1xf32> -> vector<16x1xf32>
    %206 = vector.broadcast %205 : vector<16x1xf32> to vector<16x16xf32>
    %207 = arith.mulf %202, %206 : vector<16x16xf32>
    %cst_63 = arith.constant dense<0.000000e+00> : vector<16x16xf32>
    %208 = tpu.matmul %207, %195, %cst_63 {dimension_numbers = #tpu.dot_dimension_numbers<[1], [0], [0], [1], [0, 0, 1, 1], [], []>} : vector<16x16xf32>, vector<16x16xf32>, vector<16x16xf32> -> vector<16x16xf32>
    %209 = vector.extract_strided_slice %6 {offsets = [16, 64], sizes = [16, 16], strides = [1, 1]} : vector<32x384xf32> to vector<16x16xf32>
    %210 = vector.extract_strided_slice %6 {offsets = [16, 192], sizes = [16, 16], strides = [1, 1]} : vector<32x384xf32> to vector<16x16xf32>
    %211 = vector.extract_strided_slice %6 {offsets = [16, 320], sizes = [16, 16], strides = [1, 1]} : vector<32x384xf32> to vector<16x16xf32>
    %cst_64 = arith.constant dense<0.000000e+00> : vector<16x16xf32>
    %212 = tpu.matmul %209, %210, %cst_64 {dimension_numbers = #tpu.dot_dimension_numbers<[1], [1], [0], [0], [0, 0, 1, 0], [], []>} : vector<16x16xf32>, vector<16x16xf32>, vector<16x16xf32> -> vector<16x16xf32>
    %213 = arith.addf %212, %7 : vector<16x16xf32>
    %cst_65 = arith.constant dense<0xFF800000> : vector<16xf32>
    %214 = vector.multi_reduction <maximumf>, %213, %cst_65 [1] : vector<16x16xf32> to vector<16xf32>
    %215 = vector.shape_cast %214 : vector<16xf32> to vector<16x1xf32>
    %216 = vector.broadcast %215 : vector<16x1xf32> to vector<16x16xf32>
    %217 = arith.subf %213, %216 : vector<16x16xf32>
    %218 = math.exp %217 : vector<16x16xf32>
    %cst_66 = arith.constant dense<0.000000e+00> : vector<16xf32>
    %219 = vector.multi_reduction <add>, %218, %cst_66 [1] : vector<16x16xf32> to vector<16xf32>
    %220 = vector.shape_cast %219 : vector<16xf32> to vector<16x1xf32>
    %221 = tpu.reciprocal %220 : vector<16x1xf32> -> vector<16x1xf32>
    %222 = vector.broadcast %221 : vector<16x1xf32> to vector<16x16xf32>
    %223 = arith.mulf %218, %222 : vector<16x16xf32>
    %cst_67 = arith.constant dense<0.000000e+00> : vector<16x16xf32>
    %224 = tpu.matmul %223, %211, %cst_67 {dimension_numbers = #tpu.dot_dimension_numbers<[1], [0], [0], [1], [0, 0, 1, 1], [], []>} : vector<16x16xf32>, vector<16x16xf32>, vector<16x16xf32> -> vector<16x16xf32>
    %225 = vector.extract_strided_slice %6 {offsets = [16, 80], sizes = [16, 16], strides = [1, 1]} : vector<32x384xf32> to vector<16x16xf32>
    %226 = vector.extract_strided_slice %6 {offsets = [16, 208], sizes = [16, 16], strides = [1, 1]} : vector<32x384xf32> to vector<16x16xf32>
    %227 = vector.extract_strided_slice %6 {offsets = [16, 336], sizes = [16, 16], strides = [1, 1]} : vector<32x384xf32> to vector<16x16xf32>
    %cst_68 = arith.constant dense<0.000000e+00> : vector<16x16xf32>
    %228 = tpu.matmul %225, %226, %cst_68 {dimension_numbers = #tpu.dot_dimension_numbers<[1], [1], [0], [0], [0, 0, 1, 0], [], []>} : vector<16x16xf32>, vector<16x16xf32>, vector<16x16xf32> -> vector<16x16xf32>
    %229 = arith.addf %228, %7 : vector<16x16xf32>
    %cst_69 = arith.constant dense<0xFF800000> : vector<16xf32>
    %230 = vector.multi_reduction <maximumf>, %229, %cst_69 [1] : vector<16x16xf32> to vector<16xf32>
    %231 = vector.shape_cast %230 : vector<16xf32> to vector<16x1xf32>
    %232 = vector.broadcast %231 : vector<16x1xf32> to vector<16x16xf32>
    %233 = arith.subf %229, %232 : vector<16x16xf32>
    %234 = math.exp %233 : vector<16x16xf32>
    %cst_70 = arith.constant dense<0.000000e+00> : vector<16xf32>
    %235 = vector.multi_reduction <add>, %234, %cst_70 [1] : vector<16x16xf32> to vector<16xf32>
    %236 = vector.shape_cast %235 : vector<16xf32> to vector<16x1xf32>
    %237 = tpu.reciprocal %236 : vector<16x1xf32> -> vector<16x1xf32>
    %238 = vector.broadcast %237 : vector<16x1xf32> to vector<16x16xf32>
    %239 = arith.mulf %234, %238 : vector<16x16xf32>
    %cst_71 = arith.constant dense<0.000000e+00> : vector<16x16xf32>
    %240 = tpu.matmul %239, %227, %cst_71 {dimension_numbers = #tpu.dot_dimension_numbers<[1], [0], [0], [1], [0, 0, 1, 1], [], []>} : vector<16x16xf32>, vector<16x16xf32>, vector<16x16xf32> -> vector<16x16xf32>
    %241 = vector.extract_strided_slice %6 {offsets = [16, 96], sizes = [16, 16], strides = [1, 1]} : vector<32x384xf32> to vector<16x16xf32>
    %242 = vector.extract_strided_slice %6 {offsets = [16, 224], sizes = [16, 16], strides = [1, 1]} : vector<32x384xf32> to vector<16x16xf32>
    %243 = vector.extract_strided_slice %6 {offsets = [16, 352], sizes = [16, 16], strides = [1, 1]} : vector<32x384xf32> to vector<16x16xf32>
    %cst_72 = arith.constant dense<0.000000e+00> : vector<16x16xf32>
    %244 = tpu.matmul %241, %242, %cst_72 {dimension_numbers = #tpu.dot_dimension_numbers<[1], [1], [0], [0], [0, 0, 1, 0], [], []>} : vector<16x16xf32>, vector<16x16xf32>, vector<16x16xf32> -> vector<16x16xf32>
    %245 = arith.addf %244, %7 : vector<16x16xf32>
    %cst_73 = arith.constant dense<0xFF800000> : vector<16xf32>
    %246 = vector.multi_reduction <maximumf>, %245, %cst_73 [1] : vector<16x16xf32> to vector<16xf32>
    %247 = vector.shape_cast %246 : vector<16xf32> to vector<16x1xf32>
    %248 = vector.broadcast %247 : vector<16x1xf32> to vector<16x16xf32>
    %249 = arith.subf %245, %248 : vector<16x16xf32>
    %250 = math.exp %249 : vector<16x16xf32>
    %cst_74 = arith.constant dense<0.000000e+00> : vector<16xf32>
    %251 = vector.multi_reduction <add>, %250, %cst_74 [1] : vector<16x16xf32> to vector<16xf32>
    %252 = vector.shape_cast %251 : vector<16xf32> to vector<16x1xf32>
    %253 = tpu.reciprocal %252 : vector<16x1xf32> -> vector<16x1xf32>
    %254 = vector.broadcast %253 : vector<16x1xf32> to vector<16x16xf32>
    %255 = arith.mulf %250, %254 : vector<16x16xf32>
    %cst_75 = arith.constant dense<0.000000e+00> : vector<16x16xf32>
    %256 = tpu.matmul %255, %243, %cst_75 {dimension_numbers = #tpu.dot_dimension_numbers<[1], [0], [0], [1], [0, 0, 1, 1], [], []>} : vector<16x16xf32>, vector<16x16xf32>, vector<16x16xf32> -> vector<16x16xf32>
    %257 = vector.extract_strided_slice %6 {offsets = [16, 112], sizes = [16, 16], strides = [1, 1]} : vector<32x384xf32> to vector<16x16xf32>
    %258 = vector.extract_strided_slice %6 {offsets = [16, 240], sizes = [16, 16], strides = [1, 1]} : vector<32x384xf32> to vector<16x16xf32>
    %259 = vector.extract_strided_slice %6 {offsets = [16, 368], sizes = [16, 16], strides = [1, 1]} : vector<32x384xf32> to vector<16x16xf32>
    %cst_76 = arith.constant dense<0.000000e+00> : vector<16x16xf32>
    %260 = tpu.matmul %257, %258, %cst_76 {dimension_numbers = #tpu.dot_dimension_numbers<[1], [1], [0], [0], [0, 0, 1, 0], [], []>} : vector<16x16xf32>, vector<16x16xf32>, vector<16x16xf32> -> vector<16x16xf32>
    %261 = arith.addf %260, %7 : vector<16x16xf32>
    %cst_77 = arith.constant dense<0xFF800000> : vector<16xf32>
    %262 = vector.multi_reduction <maximumf>, %261, %cst_77 [1] : vector<16x16xf32> to vector<16xf32>
    %263 = vector.shape_cast %262 : vector<16xf32> to vector<16x1xf32>
    %264 = vector.broadcast %263 : vector<16x1xf32> to vector<16x16xf32>
    %265 = arith.subf %261, %264 : vector<16x16xf32>
    %266 = math.exp %265 : vector<16x16xf32>
    %cst_78 = arith.constant dense<0.000000e+00> : vector<16xf32>
    %267 = vector.multi_reduction <add>, %266, %cst_78 [1] : vector<16x16xf32> to vector<16xf32>
    %268 = vector.shape_cast %267 : vector<16xf32> to vector<16x1xf32>
    %269 = tpu.reciprocal %268 : vector<16x1xf32> -> vector<16x1xf32>
    %270 = vector.broadcast %269 : vector<16x1xf32> to vector<16x16xf32>
    %271 = arith.mulf %266, %270 : vector<16x16xf32>
    %cst_79 = arith.constant dense<0.000000e+00> : vector<16x16xf32>
    %272 = tpu.matmul %271, %259, %cst_79 {dimension_numbers = #tpu.dot_dimension_numbers<[1], [0], [0], [1], [0, 0, 1, 1], [], []>} : vector<16x16xf32>, vector<16x16xf32>, vector<16x16xf32> -> vector<16x16xf32>
    %273 = tpu.concatenate %160, %176, %192, %208, %224, %240, %256, %272 in 1 : vector<16x16xf32>, vector<16x16xf32>, vector<16x16xf32>, vector<16x16xf32>, vector<16x16xf32>, vector<16x16xf32>, vector<16x16xf32>, vector<16x16xf32> -> vector<16x128xf32>
    %cst_80 = arith.constant dense<0.000000e+00> : vector<16x128xf32>
    %274 = tpu.matmul %273, %8, %cst_80 {dimension_numbers = #tpu.dot_dimension_numbers<[1], [0], [0], [1], [0, 0, 1, 1], [], []>} : vector<16x128xf32>, vector<128x128xf32>, vector<16x128xf32> -> vector<16x128xf32>
    %275 = vector.broadcast %9 : vector<1x128xf32> to vector<16x128xf32>
    %276 = arith.addf %274, %275 : vector<16x128xf32>
    %c1 = arith.constant 1 : index
    %c0_81 = arith.constant 0 : index
    %c0_82 = arith.constant 0 : index
    %277 = vector.load %arg7[%c1, %c0_81, %c0_82] : memref<2x16x128xf32, #tpu.memory_space<vmem>>, vector<1x16x128xf32>
    %278 = vector.shape_cast %277 : vector<1x16x128xf32> to vector<16x128xf32>
    %279 = vector.shape_cast %276 : vector<16x128xf32> to vector<1x16x128xf32>
    tpu.vector_store %arg7[%c1, %c0_81, %c0_82], %279 {strides = array<i32>} : memref<2x16x128xf32, #tpu.memory_space<vmem>>, vector<1x16x128xf32>,
    return
  }
  func.func @transform_0(%arg0: i32) -> (i32, i32, i32) {
    %c0_i32 = arith.constant 0 : i32
    %c0_i32_0 = arith.constant 0 : i32
    %c0_i32_1 = arith.constant 0 : i32
    return %arg0, %c0_i32, %c0_i32_0 : i32, i32, i32
  }
  func.func @transform_1(%arg0: i32) -> (i32, i32) {
    %c0_i32 = arith.constant 0 : i32
    %c0_i32_0 = arith.constant 0 : i32
    %c0_i32_1 = arith.constant 0 : i32
    return %c0_i32, %c0_i32_0 : i32, i32
  }
  func.func @transform_2(%arg0: i32) -> (i32, i32) {
    %c0_i32 = arith.constant 0 : i32
    %c0_i32_0 = arith.constant 0 : i32
    %c0_i32_1 = arith.constant 0 : i32
    return %c0_i32, %c0_i32_0 : i32, i32
  }
  func.func @transform_3(%arg0: i32) -> (i32, i32) {
    %c0_i32 = arith.constant 0 : i32
    %c0_i32_0 = arith.constant 0 : i32
    %c0_i32_1 = arith.constant 0 : i32
    return %c0_i32, %c0_i32_0 : i32, i32
  }
  func.func @transform_4(%arg0: i32) -> (i32, i32) {
    %c0_i32 = arith.constant 0 : i32
    %c0_i32_0 = arith.constant 0 : i32
    %c0_i32_1 = arith.constant 0 : i32
    return %c0_i32, %c0_i32_0 : i32, i32
  }
  func.func @transform_5(%arg0: i32) -> (i32, i32) {
    %c0_i32 = arith.constant 0 : i32
    %c0_i32_0 = arith.constant 0 : i32
    %c0_i32_1 = arith.constant 0 : i32
    return %c0_i32, %c0_i32_0 : i32, i32
  }
  func.func @transform_6(%arg0: i32) -> (i32, i32, i32) {
    %c0_i32 = arith.constant 0 : i32
    %c0_i32_0 = arith.constant 0 : i32
    %c0_i32_1 = arith.constant 0 : i32
    return %arg0, %c0_i32, %c0_i32_0 : i32, i32, i32
  }
}

</mosaic_0001>

<bundles_post_ra>
// kernel: tpu_custom_call.1
= control target key start
LH: loop header
LB: loop body
LE: loop exit
PB: predicated region body
PF: predicated region fallthrough
CT: control target
= control target key end

     0   :  { %11 = vsyncpa [#allocation3], 0  ;;  %s5646_s0 = inlined_call_operand.hbm [shape: f32[2,16,128], index: 0, kind: input, shape index: {}]   ;;  %s5647_s1 = inlined_call_operand.hbm [shape: f32[16,16], index: 1, kind: input, shape index: {}]   ;;  %s5648_s2 = inlined_call_operand.hbm [shape: f32[128,384], index: 2, kind: input, shape index: {}]   ;;  %s5649_s3 = inlined_call_operand.vmem [shape: f32[1,384], index: 3, kind: input, shape index: {}]   ;;  %s5650_s4 = inlined_call_operand.hbm [shape: f32[128,128], index: 4, kind: input, shape index: {}]   ;;  %s5651_s5 = inlined_call_operand.vmem [shape: f32[1,128], index: 5, kind: input, shape index: {}]   ;;  %s5652_s6 = inlined_call_operand.hbm [shape: f32[2,16,128], index: 6, kind: output, shape index: {}]  }
   0x1   :  { %12 = vsyncpa [#allocation6], 0 }
   0x2   :  { %13 = vsyncpa [#allocation9], 0 }
   0x3   :  { %14 = vsyncpa [#allocation4], 0  ;;  %s4790_s21 = smov [#allocation5]   ;;  %s4791_s23 = smov [#allocation2]  }
   0x4   :  { %s32_s22 = sshll.u32 %s4790_s21, 4  ;;  %s20_s24 = sshll.u32 %s4791_s23, 4  ;;  %s33_s22 = int_to_ptr.vmem [resolvable:$true] %s32_s22  ;;  %s21_s24 = int_to_ptr.vmem [resolvable:$true] %s20_s24 }
   0x5   :  { %s4690_s25 = scalar_lea.vmem %s33_s22, 256  ;;  %p4695_p1 = scmp.lt.s32.totalorder %s33_s22, %s33_s22 }
   0x6   :  { %p4691_p0 = scmp.ne.s32.totalorder %s33_s22, %s4690_s25  ;;  %p4696_p2 = scmp.lt.s32.totalorder %s4690_s25, %s4690_s25 }
   0x8   :  { %p4697_p3 = por %p4696_p2, %p4695_p1 }
   0xa   :  { %p4698_p4 = pnand %p4697_p3, %p4691_p0 }
   0xc   :  { %4701 = shalt.err (!%p4698_p4)
}
   0xd   :  { %s4792_s26 = smov 128   ;;  %s4793_s27 = smov 8  }
   0xe   :  { %38 = dma.hbm_to_vmem [thread:$0]  %s5647_s1, 256, %s33_s22, [#allocation6], %s4792_s26, %s4792_s26, %s4793_s27  }
   0xf   :  { %s4710_s30 = scalar_lea.vmem %s21_s24, 512  ;;  %p4715_p6 = scmp.lt.s32.totalorder %s21_s24, %s21_s24 }
  0x10   :  { %p4711_p5 = scmp.ne.s32.totalorder %s21_s24, %s4710_s30  ;;  %p4716_p7 = scmp.lt.s32.totalorder %s4710_s30, %s4710_s30 }
  0x12   :  { %p4717_p8 = por %p4716_p7, %p4715_p6 }
  0x14   :  { %p4718_p9 = pnand %p4717_p8, %p4711_p5 }
  0x16   :  { %4721 = shalt.err (!%p4718_p9)
}
  0x17   :  { %26 = dma.hbm_to_vmem [thread:$0]  %s5646_s0, 512, %s21_s24, [#allocation3], %s4792_s26, %s4792_s26, %s4793_s27  }
  0x18   :  { %s4794_s9 = smov [#allocation7]  }
  0x19   :  { %s44_s10 = sshll.u32 %s4794_s9, 4  ;;  %s45_s10 = int_to_ptr.vmem [resolvable:$true] %s44_s10 }
  0x1a   :  { %s4730_s11 = scalar_lea.vmem %s45_s10, 6144  ;;  %p4735_p11 = scmp.lt.s32.totalorder %s45_s10, %s45_s10 }
  0x1b   :  { %p4731_p10 = scmp.ne.s32.totalorder %s45_s10, %s4730_s11  ;;  %p4736_p12 = scmp.lt.s32.totalorder %s4730_s11, %s4730_s11 }
  0x1d   :  { %p4737_p13 = por %p4736_p12, %p4735_p11 }
  0x1f   :  { %p4738_p0 = pnand %p4737_p13, %p4731_p10 }
  0x21   :  { %4741 = shalt.err (!%p4738_p0)
}
  0x22   :  { %s4795_s1 = smov 384   ;;  %s4796_s12 = smov 24  }
  0x23   :  { %50 = dma.hbm_to_vmem [thread:$0]  %s5648_s2, 6144, %s45_s10, [#allocation6], %s4795_s1, %s4795_s1, %s4796_s12  }
  0x24   :  { %s4797_s15 = smov [#allocation8]  }
  0x25   :  { %s58_s16 = sshll.u32 %s4797_s15, 4  ;;  %s59_s16 = int_to_ptr.vmem [resolvable:$true] %s58_s16 }
  0x26   :  { %s4750_s0 = scalar_lea.vmem %s59_s16, 2048  ;;  %p4755_p2 = scmp.lt.s32.totalorder %s59_s16, %s59_s16 }
  0x27   :  { %p4751_p1 = scmp.ne.s32.totalorder %s59_s16, %s4750_s0  ;;  %p4756_p3 = scmp.lt.s32.totalorder %s4750_s0, %s4750_s0 }
  0x29   :  { %p4757_p4 = por %p4756_p3, %p4755_p2 }
  0x2b   :  { %p4758_p5 = pnand %p4757_p4, %p4751_p1 }
  0x2d   :  { %4761 = shalt.err (!%p4758_p5)
}
  0x2e   :  { %64 = dma.hbm_to_vmem [thread:$0]  %s5650_s4, 2048, %s59_s16, [#allocation9], %s4792_s26, %s4792_s26, %s4793_s27  }
  0x2f   :  { %4782 = dma.done.wait [#allocation3], 512  }
  0x30   :  { %4783 = vsyncadd [#allocation3], 4294966784 }
  0x31   :  { %4784 = dma.done.wait [#allocation6], 6400  }
  0x32   :  { %4785 = vsyncadd [#allocation6], 4294960896 }
  0x33   :  { %4786 = dma.done.wait [#allocation9], 2048  }
  0x34   :  { %4787 = vsyncadd [#allocation9], 4294965248  ;;  %v4798_v0 = vmov 0.0   ;;  %v129_v1 = vld [vmem:[#allocation7 + $0x170] sm:$0xff]  ;;  %v128_v2 = vld [vmem:[#allocation7 + $0x168] sm:$0xff]  ;;  %v133_v53 = vlaneseq  ;;  %vm341_vm0 = vcmask 130048  }
  0x35   :  { %212 = vmatprep.mubr.f32.mxu0 %v4798_v0  ;;  %v126_v3 = vld [vmem:[#allocation7 + $0x158] sm:$0xff]  ;;  %148 = vmatprep.subr.mxu0 %v129_v1  ;;  %v125_v4 = vld [vmem:[#allocation7 + $0x150] sm:$0xff]  ;;  %v123_v5 = vld [vmem:[#allocation7 + $0x140] sm:$0xff]  ;;  %s4800_s19 = smov 96   ;;  %s4801_s20 = smov 80   ;;  %vm1992_vm1 = vcmask 261120  }
  0x36   :  { %149 = vmatpush1.msra.mxu0 %v128_v2  ;;  %v122_v6 = vld [vmem:[#allocation7 + $0x138] sm:$0xff]  ;;  %v120_v7 = vld [vmem:[#allocation7 + $0x128] sm:$0xff]  ;;  %v119_v8 = vld [vmem:[#allocation7 + $0x120] sm:$0xff]  ;;  %v134_v54 = vshrl.u32 %v133_v53, 7  ;;  %s4802_s21 = smov 64   ;;  %s4803_s22 = smov 48  }
  0x37   :  { %150 = vmatprep.subr.mxu0 %v126_v3  ;;  %v117_v9 = vld [vmem:[#allocation7 + $0x110] sm:$0xff]  ;;  %v116_v10 = vld [vmem:[#allocation7 + $0x108] sm:$0xff]  ;;  %v114_v11 = vld [vmem:[#allocation7 + $0xf8] sm:$0xff]  ;;  %s4804_s23 = smov 32   ;;  %s4805_s24 = smov 16   ;;  %vm1995_vm2 = vcmask 392192  }
  0x38   :  { %151 = vmatpush1.msra.mxu0 %v125_v4  ;;  %v113_v12 = vld [vmem:[#allocation7 + $0xf0] sm:$0xff]  ;;  %v111_v13 = vld [vmem:[#allocation7 + $0xe0] sm:$0xff]  ;;  %v110_v15 = vld [vmem:[#allocation7 + $0xd8] sm:$0xff]  ;;  %v135_v55 = vsub.s32 0, %v134_v54  ;;  %v139_v57 = vsub.s32 1, %v134_v54  ;;  %v143_v1 = vsub.s32 2, %v134_v54 }
  0x39   :  { %152 = vmatprep.subr.mxu0 %v123_v5  ;;  %v4864_v14 = vld [vmem:[#allocation2] sm:$0xff]  ;;  %v130_v16 = vld [vmem:[#allocation7 + $0x178] sm:$0xff]  ;;  %v127_v17 = vld [vmem:[#allocation7 + $0x160] sm:$0xff]  ;;  %vm1998_vm3 = vcmask 523264   ;;  %vm2001_vm4 = vcmask 654336   ;;  %vm2004_vm5 = vcmask 785408  }
  0x3a   :  { %153 = vmatpush1.msra.mxu0 %v122_v6  ;;  %4165 = vmatprep.mubr.f32.mxu1 %v4864_v14  ;;  %v108_v18 = vld [vmem:[#allocation7 + $0xc8] sm:$0xff]  ;;  %v107_v19 = vld [vmem:[#allocation7 + $0xc0] sm:$0xff]  ;;  %v105_v21 = vld [vmem:[#allocation7 + $0xb0] sm:$0xff]  ;;  %vm2007_vm6 = vcmask 916480  }
  0x3b   :  { %154 = vmatprep.subr.mxu0 %v120_v7  ;;  %4133 = vmatprep.subr.mxu1 %v130_v16  ;;  %v124_v20 = vld [vmem:[#allocation7 + $0x148] sm:$0xff]  ;;  %v121_v23 = vld [vmem:[#allocation7 + $0x130] sm:$0xff]  ;;  %v102_v24 = vld [vmem:[#allocation7 + $0x98] sm:$0xff] }
  0x3c   :  { %155 = vmatpush1.msra.mxu0 %v119_v8  ;;  %4134 = vmatpush3.msra.mxu1 %v130_v16  ;;  %v104_v22 = vld [vmem:[#allocation7 + $0xa8] sm:$0xff]  ;;  %v101_v25 = vld [vmem:[#allocation7 + $0x90] sm:$0xff]  ;;  %v118_v26 = vld [vmem:[#allocation7 + $0x118] sm:$0xff] }
  0x3d   :  { %156 = vmatprep.subr.mxu0 %v117_v9  ;;  %4135 = vmatprep.subr.mxu1 %v127_v17  ;;  %v99_v27 = vld [vmem:[#allocation7 + $0x80] sm:$0xff]  ;;  %v98_v28 = vld [vmem:[#allocation7 + $0x78] sm:$0xff]  ;;  %v96_v30 = vld [vmem:[#allocation7 + $0x68] sm:$0xff] }
  0x3e   :  { %157 = vmatpush1.msra.mxu0 %v116_v10  ;;  %4136 = vmatpush3.msra.mxu1 %v127_v17  ;;  %v115_v29 = vld [vmem:[#allocation7 + $0x100] sm:$0xff]  ;;  %v112_v32 = vld [vmem:[#allocation7 + $0xe8] sm:$0xff]  ;;  %v93_v33 = vld [vmem:[#allocation7 + $0x50] sm:$0xff] }
  0x3f   :  { %158 = vmatprep.subr.mxu0 %v114_v11  ;;  %4137 = vmatprep.subr.mxu1 %v124_v20  ;;  %v95_v31 = vld [vmem:[#allocation7 + $0x60] sm:$0xff]  ;;  %v92_v34 = vld [vmem:[#allocation7 + $0x48] sm:$0xff]  ;;  %v109_v35 = vld [vmem:[#allocation7 + $0xd0] sm:$0xff] }
  0x40   :  { %159 = vmatpush1.msra.mxu0 %v113_v12  ;;  %4138 = vmatpush3.msra.mxu1 %v124_v20  ;;  %v90_v36 = vld [vmem:[#allocation7 + $0x38] sm:$0xff]  ;;  %v89_v37 = vld [vmem:[#allocation7 + $0x30] sm:$0xff]  ;;  %v87_v39 = vld [vmem:[#allocation7 + $0x20] sm:$0xff] }
  0x41   :  { %160 = vmatprep.subr.mxu0 %v111_v13  ;;  %4139 = vmatprep.subr.mxu1 %v121_v23  ;;  %v106_v38 = vld [vmem:[#allocation7 + $0xb8] sm:$0xff]  ;;  %v103_v41 = vld [vmem:[#allocation7 + $0xa0] sm:$0xff]  ;;  %v84_v42 = vld [vmem:[#allocation7 + $0x8] sm:$0xff] }
  0x42   :  { %161 = vmatpush1.msra.mxu0 %v110_v15  ;;  %4140 = vmatpush3.msra.mxu1 %v121_v23  ;;  %v86_v40 = vld [vmem:[#allocation7 + $0x18] sm:$0xff]  ;;  %v83_v43 = vld [vmem:[#allocation7] sm:$0xff]  ;;  %v100_v44 = vld [vmem:[#allocation7 + $0x88] sm:$0xff] }
  0x43   :  { %162 = vmatprep.subr.mxu0 %v108_v18  ;;  %4141 = vmatprep.subr.mxu1 %v118_v26  ;;  %v97_v45 = vld [vmem:[#allocation7 + $0x70] sm:$0xff]  ;;  %v94_v46 = vld [vmem:[#allocation7 + $0x58] sm:$0xff]  ;;  %v91_v48 = vld [vmem:[#allocation7 + $0x40] sm:$0xff] }
  0x44   :  { %163 = vmatpush1.msra.mxu0 %v107_v19  ;;  %4142 = vmatpush3.msra.mxu1 %v118_v26  ;;  %v80_v47 = vld [vmem:[#allocation2 + $0x8] sm:$0xff]  ;;  %v88_v49 = vld [vmem:[#allocation7 + $0x28] sm:$0xff]  ;;  %v85_v50 = vld [vmem:[#allocation7 + $0x10] sm:$0xff] }
  0x45   :  { %164 = vmatprep.subr.mxu0 %v105_v21  ;;  %4143 = vmatprep.subr.mxu1 %v115_v29  ;;  %v81_v51 = vld [vmem:[#allocation2 + $0x10] sm:$0xff]  ;;  %v82_v52 = vld [vmem:[#allocation2 + $0x18] sm:$0xff]  ;;  %v131_v56 = vld [vmem:[%s5649_s3] sm:$0x7]  ;;  %s4799_s3 = smov 112  }
  0x46   :  { %165 = vmatpush1.msra.mxu0 %v104_v22  ;;  %4144 = vmatpush3.msra.mxu1 %v115_v29  ;;  %v4874_v58 = vrot.slane %v131_v56, %v135_v55  ;;  %v4876_v59 = vrot.slane %v131_v56, %v139_v57  ;;  %v4891_v4 = vrot.slane %v131_v56, %v143_v1  ;;  %v4927_v16 = vld [vmem:[#allocation5] sm:$0xff]  ;;  %v4929_v17 = vld [vmem:[#allocation5 + $0x8] sm:$0xff] }
  0x47   :  { %166 = vmatprep.subr.mxu0 %v102_v24  ;;  %4145 = vmatprep.subr.mxu1 %v112_v32 }
  0x48   :  { %167 = vmatpush1.msra.mxu0 %v101_v25  ;;  %4146 = vmatpush3.msra.mxu1 %v112_v32 }
  0x49   :  { %168 = vmatprep.subr.mxu0 %v99_v27  ;;  %4147 = vmatprep.subr.mxu1 %v109_v35 }
  0x4a   :  { %169 = vmatpush1.msra.mxu0 %v98_v28  ;;  %4148 = vmatpush3.msra.mxu1 %v109_v35 }
  0x4b   :  { %170 = vmatprep.subr.mxu0 %v96_v30  ;;  %4149 = vmatprep.subr.mxu1 %v106_v38 }
  0x4c   :  { %171 = vmatpush1.msra.mxu0 %v95_v31  ;;  %4150 = vmatpush3.msra.mxu1 %v106_v38 }
  0x4d   :  { %172 = vmatprep.subr.mxu0 %v93_v33  ;;  %4151 = vmatprep.subr.mxu1 %v103_v41 }
  0x4e   :  { %173 = vmatpush1.msra.mxu0 %v92_v34  ;;  %4152 = vmatpush3.msra.mxu1 %v103_v41 }
  0x4f   :  { %174 = vmatprep.subr.mxu0 %v90_v36  ;;  %4153 = vmatprep.subr.mxu1 %v100_v44 }
  0x50   :  { %175 = vmatpush1.msra.mxu0 %v89_v37  ;;  %4154 = vmatpush3.msra.mxu1 %v100_v44 }
  0x51   :  { %176 = vmatprep.subr.mxu0 %v87_v39  ;;  %4155 = vmatprep.subr.mxu1 %v97_v45 }
  0x52   :  { %177 = vmatpush1.msra.mxu0 %v86_v40  ;;  %4156 = vmatpush3.msra.mxu1 %v97_v45 }
  0x53   :  { %178 = vmatprep.subr.mxu0 %v84_v42  ;;  %4157 = vmatprep.subr.mxu1 %v94_v46 }
  0x54   :  { %179 = vmatpush1.msra.mxu0 %v83_v43  ;;  %4158 = vmatpush3.msra.mxu1 %v94_v46 }
  0x55   :  { %213 = vmatmul.mubr.f32.vlgmr.msra.gmra.mxu0 %v4864_v14  ;;  %4159 = vmatprep.subr.mxu1 %v91_v48 }
  0x56   :  { %218 = vmatprep.mubr.f32.mxu0 %v4798_v0  ;;  %4160 = vmatpush3.msra.mxu1 %v91_v48 }
  0x57   :  { %4161 = vmatprep.subr.mxu1 %v88_v49 }
  0x58   :  { %4162 = vmatpush3.msra.mxu1 %v88_v49 }
  0x59   :  { %219 = vmatmul.mubr.f32.gmra.mxu0 %v80_v47  ;;  %4163 = vmatprep.subr.mxu1 %v85_v50 }
  0x5a   :  { %224 = vmatprep.mubr.f32.mxu0 %v4798_v0  ;;  %4164 = vmatpush3.msra.mxu1 %v85_v50 }
  0x5b   :  { %4166 = vmatmul.mubr.f32.vlgmr.msra.gmra.mxu1 %v80_v47 }
  0x5c   :  { %4168 = vmatprep.mubr.f32.mxu1 %v81_v51 }
  0x5d   :  { %225 = vmatmul.mubr.f32.gmra.mxu0 %v81_v51 }
  0x5e   :  { %230 = vmatprep.mubr.f32.mxu0 %v4798_v0 }
  0x5f   :  { %4169 = vmatmul.mubr.f32.gmra.mxu1 %v82_v52 }
  0x61   :  { %231 = vmatmul.mubr.f32.gmra.mxu0 %v82_v52 }
 0x115   :  { %v214_v60 = vpop.f32.mrf.mxu0 }
 0x116   :  { %v4879_v61 = vadd.f32 %v214_v60, %v4874_v58 }
 0x117   :  { %v216_v62 = vpop.f32.mrf.mxu0 }
 0x118   :  { %v4882_v63 = vadd.f32 %v216_v62, %v4876_v59  ;;  %4175 = vmatprep.mubr.msk.f32.mxu1 %vm341_vm0, %v4879_v61 }
 0x119   :  { %v220_v0 = vpop.f32.mrf.mxu0 }
 0x11a   :  { %536 = vrot.lane.b32.xlu1 %v4882_v63, %s4799_s3  ;;  %v4909_v8 = vadd.f32 %v220_v0, %v4874_v58 }
 0x11b   :  { %v222_v2 = vpop.f32.mrf.mxu0  ;;  %v4167_v5 = vpop.f32.mrf.mxu1 }
 0x11c   :  { %v4889_v3 = vadd.f32 %v222_v2, %v4876_v59  ;;  %v4902_v6 = vadd.f32 %v4167_v5, %v4891_v4 }
 0x11d   :  { %v303_v7 = vpop.f32.mrf.mxu1  ;;  %v4959_v45 = vpop.f32.mrf.mxu0 }
 0x11e   :  { %4171 = vmatprep.subr.msk.mxu1 %vm341_vm0, %v4889_v3  ;;  %740 = vrot.lane.b32.xlu1 %v4889_v3, %s4800_s19  ;;  %v4912_v9 = vadd.f32 %v303_v7, %v4891_v4 }
 0x11f   :  { %4172 = vmatpush3.xpose.msk.msra.mxu1 %vm341_vm0, %v4889_v3  ;;  %v4170_v10 = vpop.f32.mrf.mxu1  ;;  %v4961_v46 = vpop.f32.mrf.mxu0 }
 0x120   :  { %4173 = vmatprep.subr.msk.mxu1 %vm341_vm0, %v4882_v63  ;;  %v4921_v11 = vadd.f32 %v4170_v10, %v4891_v4 }
 0x121   :  { %v4925_v14 = vpop.f32.mrf.mxu1  ;;  %v4963_v47 = vpop.f32.mrf.mxu0 }
 0x122   :  { %532 = vrot.lane.b32.xlu1 %v4879_v61, %s4799_s3 }
 0x123   :  { %4174 = vmatpush3.xpose.msk.msra.mxu1 %vm341_vm0, %v4882_v63  ;;  %v4965_v48 = vpop.f32.mrf.mxu0 }
 0x124   :  { %4178 = vmatprep.subr.mxu1 %v4902_v6 }
 0x126   :  { %4176 = vmatmul.mubr.msk.f32.vlgmr.msra.gmra.mxu1 %vm341_vm0, %v4909_v8 }
 0x127   :  { %4179 = vmatpush3.msra.mxu1 %v4902_v6 }
 0x128   :  { %4180 = vmatprep.subr.mxu1 %v4912_v9 }
 0x129   :  { %4181 = vmatpush3.msra.mxu1 %v4912_v9 }
 0x18c   :  { %v537_v12 = vpop.permute.xlu1 %536 }
 0x190   :  { %v741_v13 = vpop.permute.xlu1 %740 }
 0x191   :  { %4199 = vmatprep.subr.msk.mxu0 %vm341_vm0, %v741_v13 }
 0x192   :  { %4200 = vmatpush3.xpose.msk.msra.mxu0 %vm341_vm0, %v741_v13 }
 0x194   :  { %v533_v36 = vpop.permute.xlu1 %532 }
 0x1e6   :  { %v4177_v15 = vpop.f32.mrf.mxu1 }
 0x1e7   :  { %v426_v20 = vadd.f32 %v4177_v15, %v4929_v17 }
 0x1e8   :  { %v420_v18 = vpop.f32.mrf.mxu1 }
 0x1e9   :  { %v421_v19 = vadd.f32 %v420_v18, %v4927_v16  ;;  %v432_v22 = vsel %vm341_vm0, %v426_v20, -inf }
 0x1eb   :  { %v429_v21 = vsel %vm341_vm0, %v421_v19, -inf }
 0x1ec   :  { %430 = vmax.xlane.f32.xlu0 %v429_v21 }
 0x1f0   :  { %433 = vmax.xlane.f32.xlu0 %v432_v22 }
 0x206   :  { %538 = vrot.lane.b32.xlu0 %v4889_v3, %s4799_s3 }
 0x20a   :  { %534 = vrot.lane.b32.xlu0 %v4909_v8, %s4799_s3 }
 0x20e   :  { %734 = vrot.lane.b32.xlu0 %v4879_v61, %s4800_s19 }
 0x275   :  { %v431_v23 = vpop.xlane.xlu0 %430 }
 0x276   :  { %v435_v24 = vsub.f32 %v421_v19, %v431_v23 }
 0x278   :  { %v437_v27 = vmul.f32 1.442695, %v435_v24 }
 0x279   :  { %v434_v25 = vpop.xlane.xlu0 %433 }
 0x27a   :  { %v436_v26 = vsub.f32 %v426_v20, %v434_v25 }
 0x27c   :  { %v439_v28 = vmul.f32 1.442695, %v436_v26 }
 0x27d   :  { %v539_v29 = vpop.permute.xlu0 %538 }
 0x27e   :  { %4552 = vpow2.f32 %v439_v28  ;;  %4185 = vmatprep.subr.msk.mxu1 %vm341_vm0, %v539_v29 }
 0x27f   :  { %4554 = vpow2.f32 %v437_v27 }
 0x281   :  { %v535_v30 = vpop.permute.xlu0 %534 }
 0x285   :  { %v735_v31 = vpop.permute.xlu0 %734 }
 0x286   :  { %4203 = vmatprep.mubr.msk.f32.mxu0 %vm341_vm0, %v735_v31 }
 0x28b   :  { %v4553_v32 = vpop.eup %4552 }
 0x28c   :  { %v444_v33 = vsel %vm341_vm0, %v4553_v32, 0.0  ;;  %v4555_v34 = vpop.eup %4554 }
 0x28d   :  { %445 = vadd.xlane.f32.xlu1 %v444_v33  ;;  %v441_v35 = vsel %vm341_vm0, %v4555_v34, 0.0 }
 0x291   :  { %442 = vadd.xlane.f32.xlu1 %v441_v35 }
 0x2a2   :  { %738 = vrot.lane.b32.xlu1 %v4882_v63, %s4800_s19 }
 0x2a6   :  { %736 = vrot.lane.b32.xlu1 %v4909_v8, %s4800_s19 }
 0x316   :  { %v446_v37 = vpop.xlane.xlu1 %445 }
 0x317   :  { %4556 = vrcp.f32 %v446_v37 }
 0x31a   :  { %v443_v38 = vpop.xlane.xlu1 %442 }
 0x31b   :  { %4558 = vrcp.f32 %v443_v38 }
 0x31e   :  { %v739_v39 = vpop.permute.xlu1 %738 }
 0x31f   :  { %4201 = vmatprep.subr.msk.mxu0 %vm341_vm0, %v739_v39 }
 0x320   :  { %4202 = vmatpush3.xpose.msk.msra.mxu0 %vm341_vm0, %v739_v39 }
 0x322   :  { %v737_v40 = vpop.permute.xlu1 %736 }
 0x323   :  { %4204 = vmatmul.mubr.msk.f32.vlgmr.msra.gmra.mxu0 %vm341_vm0, %v737_v40 }
 0x324   :  { %v4557_v41 = vpop.eup %4556 }
 0x325   :  { %v450_v44 = vmul.f32 %v4557_v41, %v4553_v32 }
 0x328   :  { %v4559_v42 = vpop.eup %4558 }
 0x329   :  { %v449_v43 = vmul.f32 %v4559_v42, %v4555_v34 }
 0x32b   :  { %4182 = vmatprep.mubr.msk.f32.mxu1 %vm341_vm0, %v449_v43 }
 0x32c   :  { %4183 = vmatmul.mubr.msk.f32.vlgmr.msra.gmra.mxu1 %vm341_vm0, %v450_v44 }
 0x32d   :  { %4186 = vmatpush3.xpose.msk.msra.mxu1 %vm341_vm0, %v539_v29  ;;  %4189 = vmatprep.mubr.msk.f32.mxu1 %vm341_vm0, %v533_v36 }
 0x32e   :  { %4187 = vmatprep.subr.msk.mxu1 %vm341_vm0, %v537_v12 }
 0x331   :  { %4188 = vmatpush3.xpose.msk.msra.mxu1 %vm341_vm0, %v537_v12 }
 0x334   :  { %4190 = vmatmul.mubr.msk.f32.vlgmr.msra.gmra.mxu1 %vm341_vm0, %v535_v30 }
 0x3e3   :  { %v4205_v50 = vpop.f32.mrf.mxu0 }
 0x3e4   :  { %v822_v0 = vadd.f32 %v4205_v50, %v4929_v17 }
 0x3e5   :  { %v816_v54 = vpop.f32.mrf.mxu0 }
 0x3e6   :  { %v817_v60 = vadd.f32 %v816_v54, %v4927_v16  ;;  %v828_v2 = vsel %vm341_vm0, %v822_v0, -inf }
 0x3e8   :  { %v825_v1 = vsel %vm341_vm0, %v817_v60, -inf }
 0x3ec   :  { %v4967_v49 = vpop.f32.mrf.mxu1 }
 0x3ee   :  { %v4969_v51 = vpop.f32.mrf.mxu1 }
 0x3f4   :  { %v4191_v52 = vpop.f32.mrf.mxu1 }
 0x3f5   :  { %v620_v53 = vadd.f32 %v4191_v52, %v4929_v17 }
 0x3f6   :  { %v614_v55 = vpop.f32.mrf.mxu1 }
 0x3f7   :  { %v615_v56 = vadd.f32 %v614_v55, %v4927_v16  ;;  %v626_v57 = vsel %vm341_vm0, %v620_v53, -inf }
 0x3f8   :  { %627 = vmax.xlane.f32.xlu1 %v626_v57 }
 0x3f9   :  { %v623_v62 = vsel %vm341_vm0, %v615_v56, -inf }
 0x3fa   :  { %624 = vmax.xlane.f32.xlu0 %v623_v62 }
 0x3fe   :  { %826 = vmax.xlane.f32.xlu0 %v825_v1 }
 0x402   :  { %829 = vmax.xlane.f32.xlu0 %v828_v2 }
 0x481   :  { %v628_v10 = vpop.xlane.xlu1 %627 }
 0x482   :  { %v630_v15 = vsub.f32 %v620_v53, %v628_v10 }
 0x483   :  { %v625_v5 = vpop.xlane.xlu0 %624 }
 0x484   :  { %v629_v7 = vsub.f32 %v615_v56, %v625_v5  ;;  %v633_v22 = vmul.f32 1.442695, %v630_v15 }
 0x486   :  { %v631_v18 = vmul.f32 1.442695, %v629_v7 }
 0x487   :  { %v827_v12 = vpop.xlane.xlu0 %826 }
 0x488   :  { %v831_v13 = vsub.f32 %v817_v60, %v827_v12 }
 0x48a   :  { %v833_v19 = vmul.f32 1.442695, %v831_v13 }
 0x48b   :  { %v830_v20 = vpop.xlane.xlu0 %829 }
 0x48c   :  { %4560 = vpow2.f32 %v833_v19  ;;  %v832_v21 = vsub.f32 %v822_v0, %v830_v20 }
 0x48d   :  { %4562 = vpow2.f32 %v631_v18 }
 0x48e   :  { %v835_v23 = vmul.f32 1.442695, %v832_v21 }
 0x490   :  { %4564 = vpow2.f32 %v835_v23 }
 0x491   :  { %4566 = vpow2.f32 %v633_v22 }
 0x499   :  { %v4561_v24 = vpop.eup %4560 }
 0x49a   :  { %v837_v25 = vsel %vm341_vm0, %v4561_v24, 0.0  ;;  %v4563_v26 = vpop.eup %4562 }
 0x49b   :  { %838 = vadd.xlane.f32.xlu0 %v837_v25  ;;  %v635_v28 = vsel %vm341_vm0, %v4563_v26, 0.0 }
 0x49d   :  { %v4565_v27 = vpop.eup %4564 }
 0x49e   :  { %v840_v29 = vsel %vm341_vm0, %v4565_v27, 0.0  ;;  %v4567_v30 = vpop.eup %4566 }
 0x49f   :  { %636 = vadd.xlane.f32.xlu0 %v635_v28  ;;  %841 = vadd.xlane.f32.xlu1 %v840_v29  ;;  %v638_v31 = vsel %vm341_vm0, %v4567_v30, 0.0 }
 0x4a3   :  { %639 = vadd.xlane.f32.xlu1 %v638_v31 }
 0x4b4   :  { %647 = vrot.lane.b32.xlu1 %v4912_v9, %s4799_s3 }
 0x4b5   :  { %649 = vrot.lane.b32.xlu0 %v4902_v6, %s4799_s3 }
 0x4b8   :  { %849 = vrot.lane.b32.xlu1 %v4902_v6, %s4800_s19 }
 0x4b9   :  { %940 = vrot.lane.b32.xlu0 %v4889_v3, %s4801_s20 }
 0x4bc   :  { %847 = vrot.lane.b32.xlu1 %v4912_v9, %s4800_s19 }
 0x4bd   :  { %934 = vrot.lane.b32.xlu0 %v4879_v61, %s4801_s20 }
 0x4c0   :  { %938 = vrot.lane.b32.xlu1 %v4882_v63, %s4801_s20 }
 0x4c1   :  { %936 = vrot.lane.b32.xlu0 %v4909_v8, %s4801_s20 }
 0x4c4   :  { %1140 = vrot.lane.b32.xlu1 %v4889_v3, %s4802_s21 }
 0x4c5   :  { %1134 = vrot.lane.b32.xlu0 %v4879_v61, %s4802_s21 }
 0x4c8   :  { %1138 = vrot.lane.b32.xlu1 %v4882_v63, %s4802_s21 }
 0x4cc   :  { %1136 = vrot.lane.b32.xlu1 %v4909_v8, %s4802_s21 }
 0x524   :  { %v839_v32 = vpop.xlane.xlu0 %838 }
 0x528   :  { %v842_v33 = vpop.xlane.xlu1 %841  ;;  %v637_v34 = vpop.xlane.xlu0 %636 }
 0x529   :  { %4568 = vrcp.f32 %v637_v34 }
 0x52a   :  { %4570 = vrcp.f32 %v839_v32 }
 0x52c   :  { %v640_v35 = vpop.xlane.xlu1 %639  ;;  %v650_v36 = vpop.permute.xlu0 %649 }
 0x52d   :  { %4572 = vrcp.f32 %v640_v35  ;;  %4192 = vmatprep.subr.mxu1 %v650_v36 }
 0x52e   :  { %4193 = vmatpush3.msra.mxu1 %v650_v36  ;;  %4574 = vrcp.f32 %v842_v33 }
 0x530   :  { %v648_v37 = vpop.permute.xlu1 %647  ;;  %v941_v40 = vpop.permute.xlu0 %940 }
 0x531   :  { %4194 = vmatprep.subr.mxu1 %v648_v37 }
 0x532   :  { %4195 = vmatpush3.msra.mxu1 %v648_v37 }
 0x534   :  { %v850_v38 = vpop.permute.xlu1 %849  ;;  %v935_v54 = vpop.permute.xlu0 %934 }
 0x535   :  { %4206 = vmatprep.subr.mxu1 %v850_v38 }
 0x536   :  { %v4569_v39 = vpop.eup %4568 }
 0x537   :  { %v643_v42 = vmul.f32 %v4569_v39, %v4563_v26  ;;  %v4571_v43 = vpop.eup %4570 }
 0x538   :  { %v848_v41 = vpop.permute.xlu1 %847  ;;  %v845_v53 = vmul.f32 %v4571_v43, %v4561_v24  ;;  %v937_v57 = vpop.permute.xlu0 %936 }
 0x539   :  { %4196 = vmatprep.mubr.msk.f32.mxu1 %vm341_vm0, %v643_v42 }
 0x53a   :  { %v4573_v44 = vpop.eup %4572 }
 0x53b   :  { %v644_v50 = vmul.f32 %v4573_v44, %v4567_v30  ;;  %v4575_v52 = vpop.eup %4574 }
 0x53c   :  { %v939_v55 = vpop.permute.xlu1 %938  ;;  %v846_v56 = vmul.f32 %v4575_v52, %v4565_v27  ;;  %v1135_v62 = vpop.permute.xlu0 %1134 }
 0x53d   :  { %4197 = vmatmul.mubr.msk.f32.vlgmr.msra.gmra.mxu1 %vm341_vm0, %v644_v50 }
 0x53e   :  { %4207 = vmatpush3.msra.mxu1 %v850_v38  ;;  %4210 = vmatprep.mubr.msk.f32.mxu1 %vm341_vm0, %v845_v53 }
 0x53f   :  { %4208 = vmatprep.subr.mxu1 %v848_v41 }
 0x540   :  { %4209 = vmatpush3.msra.mxu1 %v848_v41  ;;  %v1141_v60 = vpop.permute.xlu1 %1140 }
 0x541   :  { %4213 = vmatprep.subr.msk.mxu1 %vm341_vm0, %v941_v40  ;;  %4211 = vmatmul.mubr.msk.f32.vlgmr.msra.gmra.mxu1 %vm341_vm0, %v846_v56 }
 0x542   :  { %4214 = vmatpush3.xpose.msk.msra.mxu1 %vm341_vm0, %v941_v40  ;;  %4217 = vmatprep.mubr.msk.f32.mxu1 %vm341_vm0, %v935_v54 }
 0x543   :  { %4215 = vmatprep.subr.msk.mxu1 %vm341_vm0, %v939_v55 }
 0x544   :  { %v1139_v0 = vpop.permute.xlu1 %1138 }
 0x546   :  { %4216 = vmatpush3.xpose.msk.msra.mxu1 %vm341_vm0, %v939_v55 }
 0x547   :  { %4227 = vmatprep.subr.msk.mxu1 %vm341_vm0, %v1141_v60 }
 0x548   :  { %v1137_v1 = vpop.permute.xlu1 %1136 }
 0x549   :  { %4218 = vmatmul.mubr.msk.f32.vlgmr.msra.gmra.mxu1 %vm341_vm0, %v937_v57 }
 0x54a   :  { %4228 = vmatpush3.xpose.msk.msra.mxu1 %vm341_vm0, %v1141_v60  ;;  %4231 = vmatprep.mubr.msk.f32.mxu1 %vm341_vm0, %v1135_v62 }
 0x54b   :  { %4229 = vmatprep.subr.msk.mxu1 %vm341_vm0, %v1139_v0 }
 0x54e   :  { %4230 = vmatpush3.xpose.msk.msra.mxu1 %vm341_vm0, %v1139_v0 }
 0x551   :  { %4232 = vmatmul.mubr.msk.f32.vlgmr.msra.gmra.mxu1 %vm341_vm0, %v1137_v1 }
 0x5fd   :  { %v5023_v2 = vpop.f32.mrf.mxu1 }
 0x5ff   :  { %v5025_v5 = vpop.f32.mrf.mxu1 }
 0x600   :  { %v4482_v7 = vpack.i.bf16 %v5023_v2, %v5025_v5 }
 0x601   :  { %v5029_v10 = vpop.f32.mrf.mxu1 }
 0x603   :  { %v5031_v12 = vpop.f32.mrf.mxu1 }
 0x604   :  { %v4487_v13 = vpack.i.bf16 %v5029_v10, %v5031_v12  ;;  %v5336_v10 = vld [vmem:[#allocation8 + $0x30] sm:$0xff]  ;;  %v5340_v12 = vld [vmem:[#allocation8 + $0x28] sm:$0xff] }
 0x609   :  { %v4219_v15 = vpop.f32.mrf.mxu1 }
 0x60a   :  { %v1022_v25 = vadd.f32 %v4219_v15, %v4929_v17 }
 0x60b   :  { %v1016_v18 = vpop.f32.mrf.mxu1 }
 0x60c   :  { %v1028_v26 = vsel %vm341_vm0, %v1022_v25, -inf  ;;  %v1017_v44 = vadd.f32 %v1016_v18, %v4927_v16 }
 0x60e   :  { %v1025_v50 = vsel %vm341_vm0, %v1017_v44, -inf }
 0x611   :  { %v4233_v19 = vpop.f32.mrf.mxu1 }
 0x612   :  { %v1222_v20 = vadd.f32 %v4233_v19, %v4929_v17 }
 0x613   :  { %v1216_v21 = vpop.f32.mrf.mxu1 }
 0x614   :  { %v1217_v22 = vadd.f32 %v1216_v21, %v4927_v16  ;;  %v1228_v23 = vsel %vm341_vm0, %v1222_v20, -inf }
 0x615   :  { %1229 = vmax.xlane.f32.xlu1 %v1228_v23 }
 0x616   :  { %v1225_v24 = vsel %vm341_vm0, %v1217_v22, -inf }
 0x617   :  { %1226 = vmax.xlane.f32.xlu0 %v1225_v24 }
 0x626   :  { %1247 = vrot.lane.b32.xlu1 %v4912_v9, %s4802_s21 }
 0x62a   :  { %1340 = vrot.lane.b32.xlu1 %v4889_v3, %s4803_s22 }
 0x62e   :  { %1338 = vrot.lane.b32.xlu1 %v4882_v63, %s4803_s22 }
 0x632   :  { %1336 = vrot.lane.b32.xlu1 %v4909_v8, %s4803_s22 }
 0x656   :  { %1029 = vmax.xlane.f32.xlu1 %v1028_v26 }
 0x69e   :  { %v1230_v27 = vpop.xlane.xlu1 %1229 }
 0x69f   :  { %v1232_v28 = vsub.f32 %v1222_v20, %v1230_v27 }
 0x6a0   :  { %v1227_v29 = vpop.xlane.xlu0 %1226 }
 0x6a1   :  { %v1235_v30 = vmul.f32 1.442695, %v1232_v28  ;;  %v1231_v31 = vsub.f32 %v1217_v22, %v1227_v29 }
 0x6a2   :  { %v1248_v37 = vpop.permute.xlu1 %1247 }
 0x6a3   :  { %4576 = vpow2.f32 %v1235_v30  ;;  %v1233_v32 = vmul.f32 1.442695, %v1231_v31 }
 0x6a5   :  { %4578 = vpow2.f32 %v1233_v32 }
 0x6a6   :  { %v1341_v38 = vpop.permute.xlu1 %1340 }
 0x6aa   :  { %v1339_v39 = vpop.permute.xlu1 %1338 }
 0x6ae   :  { %v1337_v40 = vpop.permute.xlu1 %1336 }
 0x6b0   :  { %v4577_v33 = vpop.eup %4576 }
 0x6b1   :  { %v1240_v34 = vsel %vm341_vm0, %v4577_v33, 0.0 }
 0x6b2   :  { %v4579_v35 = vpop.eup %4578  ;;  %1241 = vadd.xlane.f32.xlu0 %v1240_v34 }
 0x6b3   :  { %v1237_v36 = vsel %vm341_vm0, %v4579_v35, 0.0 }
 0x6b6   :  { %1238 = vadd.xlane.f32.xlu0 %v1237_v36 }
 0x6cc   :  { %1249 = vrot.lane.b32.xlu0 %v4902_v6, %s4802_s21 }
 0x6d0   :  { %1334 = vrot.lane.b32.xlu0 %v4879_v61, %s4803_s22 }
 0x6df   :  { %v1030_v41 = vpop.xlane.xlu1 %1029 }
 0x6e0   :  { %v1032_v42 = vsub.f32 %v1022_v25, %v1030_v41 }
 0x6e2   :  { %v1035_v43 = vmul.f32 1.442695, %v1032_v42 }
 0x6e4   :  { %4580 = vpow2.f32 %v1035_v43 }
 0x6ef   :  { %1026 = vmax.xlane.f32.xlu0 %v1025_v50 }
 0x6f1   :  { %v5057_v52 = vpop.eup %4580 }
 0x6f2   :  { %v1040_v53 = vsel %vm341_vm0, %v5057_v52, 0.0 }
 0x6f3   :  { %1041 = vadd.xlane.f32.xlu1 %v1040_v53 }
 0x704   :  { %1047 = vrot.lane.b32.xlu1 %v4912_v9, %s4801_s20 }
 0x708   :  { %1449 = vrot.lane.b32.xlu1 %v4902_v6, %s4803_s22 }
 0x70c   :  { %1447 = vrot.lane.b32.xlu1 %v4912_v9, %s4803_s22 }
 0x73b   :  { %v1242_v54 = vpop.xlane.xlu0 %1241 }
 0x73c   :  { %4582 = vrcp.f32 %v1242_v54 }
 0x73f   :  { %v1239_v55 = vpop.xlane.xlu0 %1238 }
 0x740   :  { %4584 = vrcp.f32 %v1239_v55 }
 0x743   :  { %v1250_v56 = vpop.permute.xlu0 %1249 }
 0x744   :  { %4234 = vmatprep.subr.mxu1 %v1250_v56 }
 0x745   :  { %4235 = vmatpush3.msra.mxu1 %v1250_v56 }
 0x746   :  { %4236 = vmatprep.subr.mxu1 %v1248_v37 }
 0x747   :  { %4237 = vmatpush3.msra.mxu1 %v1248_v37  ;;  %v1335_v1 = vpop.permute.xlu0 %1334 }
 0x748   :  { %4241 = vmatprep.subr.msk.mxu1 %vm341_vm0, %v1341_v38 }
 0x749   :  { %v4583_v57 = vpop.eup %4582 }
 0x74a   :  { %v1246_v0 = vmul.f32 %v4583_v57, %v4577_v33 }
 0x74d   :  { %v4585_v60 = vpop.eup %4584 }
 0x74e   :  { %v1245_v62 = vmul.f32 %v4585_v60, %v4579_v35 }
 0x750   :  { %4238 = vmatprep.mubr.msk.f32.mxu1 %vm341_vm0, %v1245_v62 }
 0x751   :  { %4239 = vmatmul.mubr.msk.f32.vlgmr.msra.gmra.mxu1 %vm341_vm0, %v1246_v0 }
 0x752   :  { %4242 = vmatpush3.xpose.msk.msra.mxu1 %vm341_vm0, %v1341_v38  ;;  %4245 = vmatprep.mubr.msk.f32.mxu1 %vm341_vm0, %v1335_v1 }
 0x753   :  { %4243 = vmatprep.subr.msk.mxu1 %vm341_vm0, %v1339_v39 }
 0x756   :  { %4244 = vmatpush3.xpose.msk.msra.mxu1 %vm341_vm0, %v1339_v39 }
 0x759   :  { %4246 = vmatmul.mubr.msk.f32.vlgmr.msra.gmra.mxu1 %vm341_vm0, %v1337_v40 }
 0x778   :  { %v1027_v15 = vpop.xlane.xlu0 %1026 }
 0x779   :  { %v1031_v18 = vsub.f32 %v1017_v44, %v1027_v15 }
 0x77b   :  { %v1033_v20 = vmul.f32 1.442695, %v1031_v18 }
 0x77c   :  { %v1042_v34 = vpop.xlane.xlu1 %1041 }
 0x77d   :  { %4586 = vpow2.f32 %v1033_v20 }
 0x780   :  { %v1048_v39 = vpop.permute.xlu1 %1047 }
 0x784   :  { %v1450_v41 = vpop.permute.xlu1 %1449 }
 0x788   :  { %v1448_v57 = vpop.permute.xlu1 %1447 }
 0x78a   :  { %v4587_v29 = vpop.eup %4586 }
 0x78b   :  { %v1037_v30 = vsel %vm341_vm0, %v4587_v29, 0.0 }
 0x811   :  { %v5075_v19 = vpop.f32.mrf.mxu1 }
 0x813   :  { %v5077_v21 = vpop.f32.mrf.mxu1 }
 0x814   :  { %v4497_v22 = vpack.i.bf16 %v5075_v19, %v5077_v21  ;;  %v5360_v19 = vld [vmem:[#allocation8 + $0x10] sm:$0xff]  ;;  %v5364_v21 = vld [vmem:[#allocation8 + $0x8] sm:$0xff] }
 0x819   :  { %v4247_v23 = vpop.f32.mrf.mxu1 }
 0x81a   :  { %v1422_v26 = vadd.f32 %v4247_v23, %v4929_v17 }
 0x81b   :  { %v1416_v24 = vpop.f32.mrf.mxu1 }
 0x81c   :  { %v1417_v25 = vadd.f32 %v1416_v24, %v4927_v16  ;;  %v1428_v28 = vsel %vm341_vm0, %v1422_v26, -inf }
 0x81e   :  { %v1425_v27 = vsel %vm341_vm0, %v1417_v25, -inf }
 0x81f   :  { %1426 = vmax.xlane.f32.xlu0 %v1425_v27 }
 0x823   :  { %1429 = vmax.xlane.f32.xlu0 %v1428_v28 }
 0x827   :  { %1038 = vadd.xlane.f32.xlu0 %v1037_v30 }
 0x83d   :  { %1049 = vrot.lane.b32.xlu0 %v4902_v6, %s4801_s20 }
 0x8a8   :  { %v1427_v31 = vpop.xlane.xlu0 %1426 }
 0x8a9   :  { %v1431_v32 = vsub.f32 %v1417_v25, %v1427_v31 }
 0x8ab   :  { %v1433_v33 = vmul.f32 1.442695, %v1431_v32 }
 0x8ac   :  { %v1430_v35 = vpop.xlane.xlu0 %1429 }
 0x8ad   :  { %4588 = vpow2.f32 %v1433_v33  ;;  %v1432_v36 = vsub.f32 %v1422_v26, %v1430_v35 }
 0x8ae   :  { %4590 = vrcp.f32 %v1042_v34 }
 0x8af   :  { %v1435_v37 = vmul.f32 1.442695, %v1432_v36 }
 0x8b0   :  { %v1039_v38 = vpop.xlane.xlu0 %1038 }
 0x8b1   :  { %4592 = vpow2.f32 %v1435_v37 }
 0x8b2   :  { %4594 = vrcp.f32 %v1039_v38 }
 0x8b4   :  { %v1050_v40 = vpop.permute.xlu0 %1049 }
 0x8b5   :  { %4220 = vmatprep.subr.mxu0 %v1050_v40 }
 0x8b6   :  { %4221 = vmatpush3.msra.mxu0 %v1050_v40 }
 0x8b7   :  { %4222 = vmatprep.subr.mxu0 %v1048_v39 }
 0x8b8   :  { %4223 = vmatpush3.msra.mxu0 %v1048_v39 }
 0x8b9   :  { %4248 = vmatprep.subr.mxu0 %v1450_v41 }
 0x8ba   :  { %v4589_v42 = vpop.eup %4588 }
 0x8bb   :  { %v1437_v43 = vsel %vm341_vm0, %v4589_v42, 0.0  ;;  %v4591_v44 = vpop.eup %4590 }
 0x8bc   :  { %1438 = vadd.xlane.f32.xlu0 %v1437_v43  ;;  %v1046_v56 = vmul.f32 %v4591_v44, %v5057_v52 }
 0x8be   :  { %v4593_v50 = vpop.eup %4592 }
 0x8bf   :  { %v4595_v53 = vpop.eup %4594  ;;  %v1440_v54 = vsel %vm341_vm0, %v4593_v50, 0.0 }
 0x8c0   :  { %1441 = vadd.xlane.f32.xlu1 %v1440_v54  ;;  %v1045_v55 = vmul.f32 %v4595_v53, %v4587_v29 }
 0x8c2   :  { %4224 = vmatprep.mubr.msk.f32.mxu0 %vm341_vm0, %v1045_v55 }
 0x8c3   :  { %4225 = vmatmul.mubr.msk.f32.vlgmr.msra.gmra.mxu0 %vm341_vm0, %v1046_v56 }
 0x8c4   :  { %4249 = vmatpush3.msra.mxu0 %v1450_v41 }
 0x8c5   :  { %4250 = vmatprep.subr.mxu0 %v1448_v57 }
 0x8c6   :  { %4251 = vmatpush3.msra.mxu0 %v1448_v57 }
 0x8d1   :  { %1538 = vrot.lane.b32.xlu1 %v4882_v63, %s4804_s23 }
 0x8d2   :  { %1540 = vrot.lane.b32.xlu0 %v4889_v3, %s4804_s23 }
 0x8d5   :  { %1536 = vrot.lane.b32.xlu1 %v4909_v8, %s4804_s23 }
 0x8d6   :  { %1534 = vrot.lane.b32.xlu0 %v4879_v61, %s4804_s23 }
 0x945   :  { %v1439_v52 = vpop.xlane.xlu0 %1438 }
 0x946   :  { %4596 = vrcp.f32 %v1439_v52 }
 0x949   :  { %v1442_v60 = vpop.xlane.xlu1 %1441  ;;  %v1541_v62 = vpop.permute.xlu0 %1540 }
 0x94a   :  { %4598 = vrcp.f32 %v1442_v60  ;;  %4255 = vmatprep.subr.msk.mxu0 %vm341_vm0, %v1541_v62 }
 0x94d   :  { %v1535_v20 = vpop.permute.xlu0 %1534  ;;  %v1539_v23 = vpop.permute.xlu1 %1538 }
 0x951   :  { %v1537_v24 = vpop.permute.xlu1 %1536 }
 0x953   :  { %v4597_v0 = vpop.eup %4596 }
 0x954   :  { %v1445_v1 = vmul.f32 %v4597_v0, %v4589_v42  ;;  %v5152_v0 = vadd.f32 %v4959_v45, %v4874_v58  ;;  %v5169_v45 = vadd.f32 %v4963_v47, %v4874_v58 }
 0x956   :  { %4252 = vmatprep.mubr.msk.f32.mxu0 %vm341_vm0, %v1445_v1 }
 0x957   :  { %v4599_v15 = vpop.eup %4598 }
 0x958   :  { %v1446_v18 = vmul.f32 %v4599_v15, %v4593_v50  ;;  %v5156_v15 = vadd.f32 %v4961_v46, %v4876_v59 }
 0x95a   :  { %4253 = vmatmul.mubr.msk.f32.vlgmr.msra.gmra.mxu0 %vm341_vm0, %v1446_v18 }
 0x95b   :  { %4256 = vmatpush3.xpose.msk.msra.mxu0 %vm341_vm0, %v1541_v62  ;;  %4259 = vmatprep.mubr.msk.f32.mxu0 %vm341_vm0, %v1535_v20  ;;  %v5145_v62 = vadd.f32 %v4965_v48, %v4876_v59  ;;  %v5174_v59 = vadd.f32 %v4925_v14, %v4891_v4 }
 0x95c   :  { %4257 = vmatprep.subr.msk.mxu0 %vm341_vm0, %v1539_v23 }
 0x95f   :  { %4258 = vmatpush3.xpose.msk.msra.mxu0 %vm341_vm0, %v1539_v23 }
 0x962   :  { %4260 = vmatmul.mubr.msk.f32.vlgmr.msra.gmra.mxu0 %vm341_vm0, %v1537_v24 }
 0x983   :  { %v5109_v25 = vpop.f32.mrf.mxu0 }
 0x985   :  { %v5111_v26 = vpop.f32.mrf.mxu0 }
 0xa1a   :  { %v5113_v27 = vpop.f32.mrf.mxu0 }
 0xa1c   :  { %v5115_v28 = vpop.f32.mrf.mxu0 }
 0xa1d   :  { %v4502_v29 = vpack.i.bf16 %v5113_v27, %v5115_v28 }
 0xa22   :  { %v4261_v30 = vpop.f32.mrf.mxu0 }
 0xa23   :  { %v1622_v31 = vadd.f32 %v4261_v30, %v4929_v17 }
 0xa24   :  { %v1616_v32 = vpop.f32.mrf.mxu0 }
 0xa25   :  { %v1617_v33 = vadd.f32 %v1616_v32, %v4927_v16  ;;  %v1628_v34 = vsel %vm341_vm0, %v1622_v31, -inf }
 0xa26   :  { %1629 = vmax.xlane.f32.xlu1 %v1628_v34 }
 0xa27   :  { %v1625_v35 = vsel %vm341_vm0, %v1617_v33, -inf }
 0xa28   :  { %1626 = vmax.xlane.f32.xlu0 %v1625_v35 }
 0xa37   :  { %1647 = vrot.lane.b32.xlu1 %v4912_v9, %s4804_s23 }
 0xa3b   :  { %1740 = vrot.lane.b32.xlu1 %v4889_v3, %s4805_s24 }
 0xa3f   :  { %1738 = vrot.lane.b32.xlu1 %v4882_v63, %s4805_s24 }
 0xa43   :  { %1736 = vrot.lane.b32.xlu1 %v4909_v8, %s4805_s24 }
 0xaaf   :  { %v1630_v36 = vpop.xlane.xlu1 %1629 }
 0xab0   :  { %v1632_v37 = vsub.f32 %v1622_v31, %v1630_v36 }
 0xab1   :  { %v1627_v38 = vpop.xlane.xlu0 %1626 }
 0xab2   :  { %v1635_v39 = vmul.f32 1.442695, %v1632_v37  ;;  %v1631_v40 = vsub.f32 %v1617_v33, %v1627_v38 }
 0xab3   :  { %v1648_v50 = vpop.permute.xlu1 %1647 }
 0xab4   :  { %4600 = vpow2.f32 %v1635_v39  ;;  %v1633_v41 = vmul.f32 1.442695, %v1631_v40 }
 0xab6   :  { %4602 = vpow2.f32 %v1633_v41 }
 0xab7   :  { %v1741_v54 = vpop.permute.xlu1 %1740 }
 0xabb   :  { %v1739_v60 = vpop.permute.xlu1 %1738 }
 0xabf   :  { %v1737_v1 = vpop.permute.xlu1 %1736 }
 0xac1   :  { %v4601_v42 = vpop.eup %4600 }
 0xac2   :  { %v1640_v43 = vsel %vm341_vm0, %v4601_v42, 0.0 }
 0xac3   :  { %v4603_v44 = vpop.eup %4602  ;;  %1641 = vadd.xlane.f32.xlu0 %v1640_v43 }
 0xac4   :  { %v1637_v3 = vsel %vm341_vm0, %v4603_v44, 0.0 }
 0xac7   :  { %1638 = vadd.xlane.f32.xlu0 %v1637_v3 }
 0xadd   :  { %1649 = vrot.lane.b32.xlu0 %v4902_v6, %s4804_s23 }
 0xae1   :  { %1734 = vrot.lane.b32.xlu0 %v4879_v61, %s4805_s24 }
 0xb4c   :  { %v1642_v63 = vpop.xlane.xlu0 %1641 }
 0xb4d   :  { %4604 = vrcp.f32 %v1642_v63 }
 0xb50   :  { %v1639_v8 = vpop.xlane.xlu0 %1638 }
 0xb51   :  { %4606 = vrcp.f32 %v1639_v8 }
 0xb54   :  { %v1650_v53 = vpop.permute.xlu0 %1649 }
 0xb55   :  { %4262 = vmatprep.subr.mxu1 %v1650_v53 }
 0xb56   :  { %4263 = vmatpush3.msra.mxu1 %v1650_v53 }
 0xb57   :  { %4264 = vmatprep.subr.mxu1 %v1648_v50 }
 0xb58   :  { %4265 = vmatpush3.msra.mxu1 %v1648_v50  ;;  %v1735_v61 = vpop.permute.xlu0 %1734 }
 0xb59   :  { %4269 = vmatprep.subr.msk.mxu1 %vm341_vm0, %v1741_v54 }
 0xb5a   :  { %v4605_v55 = vpop.eup %4604 }
 0xb5b   :  { %v1646_v52 = vmul.f32 %v4605_v55, %v4601_v42 }
 0xb5e   :  { %v4607_v56 = vpop.eup %4606 }
 0xb5f   :  { %v1645_v57 = vmul.f32 %v4607_v56, %v4603_v44 }
 0xb61   :  { %4266 = vmatprep.mubr.msk.f32.mxu1 %vm341_vm0, %v1645_v57 }
 0xb62   :  { %4267 = vmatmul.mubr.msk.f32.vlgmr.msra.gmra.mxu1 %vm341_vm0, %v1646_v52 }
 0xb63   :  { %4270 = vmatpush3.xpose.msk.msra.mxu1 %vm341_vm0, %v1741_v54  ;;  %4273 = vmatprep.mubr.msk.f32.mxu1 %vm341_vm0, %v1735_v61 }
 0xb64   :  { %4271 = vmatprep.subr.msk.mxu1 %vm341_vm0, %v1739_v60 }
 0xb67   :  { %4272 = vmatpush3.xpose.msk.msra.mxu1 %vm341_vm0, %v1739_v60 }
 0xb68   :  { %4318 = vmatprep.subr.msk.mxu1 %vm341_vm0, %v5145_v62 }
 0xb6a   :  { %4274 = vmatmul.mubr.msk.f32.vlgmr.msra.gmra.mxu1 %vm341_vm0, %v1737_v1 }
 0xb6b   :  { %4319 = vmatpush3.xpose.msk.msra.mxu1 %vm341_vm0, %v5145_v62  ;;  %4322 = vmatprep.mubr.msk.f32.mxu1 %vm341_vm0, %v5152_v0 }
 0xb6c   :  { %4320 = vmatprep.subr.msk.mxu1 %vm341_vm0, %v5156_v15 }
 0xb6f   :  { %4321 = vmatpush3.xpose.msk.msra.mxu1 %vm341_vm0, %v5156_v15 }
 0xb70   :  { %4325 = vmatprep.subr.mxu1 %v4921_v11 }
 0xb72   :  { %4323 = vmatmul.mubr.msk.f32.vlgmr.msra.gmra.mxu1 %vm341_vm0, %v5169_v45 }
 0xb73   :  { %4326 = vmatpush3.msra.mxu1 %v4921_v11 }
 0xb74   :  { %4327 = vmatprep.subr.mxu1 %v5174_v59 }
 0xb75   :  { %4328 = vmatpush3.msra.mxu1 %v5174_v59 }
 0xc22   :  { %v5181_v46 = vpop.f32.mrf.mxu1 }
 0xc24   :  { %v5183_v48 = vpop.f32.mrf.mxu1 }
 0xc25   :  { %v4507_v58 = vpack.i.bf16 %v5181_v46, %v5183_v48 }
 0xc2a   :  { %v5187_v47 = vpop.f32.mrf.mxu1 }
 0xc2c   :  { %v5189_v4 = vpop.f32.mrf.mxu1 }
 0xc32   :  { %v4324_v14 = vpop.f32.mrf.mxu1 }
 0xc33   :  { %v2177_v18 = vadd.f32 %v4324_v14, %v4929_v17 }
 0xc34   :  { %v2171_v20 = vpop.f32.mrf.mxu1 }
 0xc35   :  { %v2172_v23 = vadd.f32 %v2171_v20, %v4927_v16  ;;  %v2183_v24 = vsel %vm341_vm0, %v2177_v18, -inf }
 0xc36   :  { %2184 = vmax.xlane.f32.xlu1 %v2183_v24 }
 0xc37   :  { %v2180_v30 = vsel %vm341_vm0, %v2172_v23, -inf }
 0xc38   :  { %2181 = vmax.xlane.f32.xlu0 %v2180_v30 }
 0xc47   :  { %2287 = vrot.lane.b32.xlu1 %v5156_v15, %s4799_s3 }
 0xc4b   :  { %2283 = vrot.lane.b32.xlu1 %v5152_v0, %s4799_s3 }
 0xc4f   :  { %2285 = vrot.lane.b32.xlu1 %v5169_v45, %s4799_s3 }
 0xcbf   :  { %v2185_v31 = vpop.xlane.xlu1 %2184 }
 0xcc0   :  { %v2187_v32 = vsub.f32 %v2177_v18, %v2185_v31  ;;  %v1822_v18 = vadd.f32 %v5187_v47, %v4929_v17 }
 0xcc1   :  { %v2182_v33 = vpop.xlane.xlu0 %2181 }
 0xcc2   :  { %v2190_v34 = vmul.f32 1.442695, %v2187_v32  ;;  %v2186_v35 = vsub.f32 %v2172_v23, %v2182_v33  ;;  %v1828_v20 = vsel %vm341_vm0, %v1822_v18, -inf }
 0xcc3   :  { %v2288_v44 = vpop.permute.xlu1 %2287 }
 0xcc4   :  { %4608 = vpow2.f32 %v2190_v34  ;;  %v2188_v36 = vmul.f32 1.442695, %v2186_v35 }
 0xcc6   :  { %4610 = vpow2.f32 %v2188_v36 }
 0xcc7   :  { %v2284_v53 = vpop.permute.xlu1 %2283 }
 0xccb   :  { %v2286_v54 = vpop.permute.xlu1 %2285 }
 0xcd1   :  { %v4609_v37 = vpop.eup %4608 }
 0xcd2   :  { %v2195_v38 = vsel %vm341_vm0, %v4609_v37, 0.0 }
 0xcd3   :  { %v4611_v39 = vpop.eup %4610  ;;  %2196 = vadd.xlane.f32.xlu0 %v2195_v38 }
 0xcd4   :  { %v2192_v40 = vsel %vm341_vm0, %v4611_v39, 0.0 }
 0xcd7   :  { %2193 = vadd.xlane.f32.xlu0 %v2192_v40 }
 0xced   :  { %2289 = vrot.lane.b32.xlu0 %v5145_v62, %s4799_s3 }
 0xd5c   :  { %v2197_v41 = vpop.xlane.xlu0 %2196 }
 0xd5d   :  { %4612 = vrcp.f32 %v2197_v41 }
 0xd60   :  { %v2194_v42 = vpop.xlane.xlu0 %2193 }
 0xd61   :  { %4614 = vrcp.f32 %v2194_v42 }
 0xd64   :  { %v2290_v43 = vpop.permute.xlu0 %2289 }
 0xd65   :  { %4332 = vmatprep.subr.msk.mxu1 %vm341_vm0, %v2290_v43 }
 0xd6a   :  { %v4613_v3 = vpop.eup %4612 }
 0xd6b   :  { %v2201_v50 = vmul.f32 %v4613_v3, %v4609_v37 }
 0xd6e   :  { %v4615_v63 = vpop.eup %4614 }
 0xd6f   :  { %v2200_v8 = vmul.f32 %v4615_v63, %v4611_v39 }
 0xd71   :  { %4329 = vmatprep.mubr.msk.f32.mxu1 %vm341_vm0, %v2200_v8 }
 0xd72   :  { %4330 = vmatmul.mubr.msk.f32.vlgmr.msra.gmra.mxu1 %vm341_vm0, %v2201_v50 }
 0xd73   :  { %4333 = vmatpush3.xpose.msk.msra.mxu1 %vm341_vm0, %v2290_v43  ;;  %4336 = vmatprep.mubr.msk.f32.mxu1 %vm341_vm0, %v2284_v53 }
 0xd74   :  { %4334 = vmatprep.subr.msk.mxu1 %vm341_vm0, %v2288_v44 }
 0xd77   :  { %4335 = vmatpush3.xpose.msk.msra.mxu1 %vm341_vm0, %v2288_v44  ;;  %v1817_v44 = vadd.f32 %v5189_v4, %v4927_v16 }
 0xd79   :  { %v1825_v63 = vsel %vm341_vm0, %v1817_v44, -inf }
 0xd7a   :  { %4337 = vmatmul.mubr.msk.f32.vlgmr.msra.gmra.mxu1 %vm341_vm0, %v2286_v54 }
 0xe32   :  { %v5213_v55 = vpop.f32.mrf.mxu1 }
 0xe34   :  { %v5215_v56 = vpop.f32.mrf.mxu1 }
 0xe3a   :  { %v4338_v57 = vpop.f32.mrf.mxu1 }
 0xe3b   :  { %v2371_v52 = vadd.f32 %v4338_v57, %v4929_v17 }
 0xe3c   :  { %v2365_v61 = vpop.f32.mrf.mxu1 }
 0xe3d   :  { %v2366_v60 = vadd.f32 %v2365_v61, %v4927_v16  ;;  %v2377_v1 = vsel %vm341_vm0, %v2371_v52, -inf }
 0xe3e   :  { %2378 = vmax.xlane.f32.xlu1 %v2377_v1 }
 0xe3f   :  { %v2374_v14 = vsel %vm341_vm0, %v2366_v60, -inf }
 0xe40   :  { %2375 = vmax.xlane.f32.xlu0 %v2374_v14 }
 0xe4f   :  { %2398 = vrot.lane.b32.xlu1 %v5174_v59, %s4799_s3 }
 0xe53   :  { %2491 = vrot.lane.b32.xlu1 %v5145_v62, %s4800_s19 }
 0xe56   :  { %2400 = vrot.lane.b32.xlu0 %v4921_v11, %s4799_s3 }
 0xe57   :  { %2489 = vrot.lane.b32.xlu1 %v5156_v15, %s4800_s19 }
 0xe5b   :  { %2691 = vrot.lane.b32.xlu1 %v5145_v62, %s4801_s20 }
 0xe5f   :  { %2487 = vrot.lane.b32.xlu1 %v5169_v45, %s4800_s19 }
 0xe83   :  { %1829 = vmax.xlane.f32.xlu1 %v1828_v20 }
 0xe94   :  { %2685 = vrot.lane.b32.xlu1 %v5152_v0, %s4801_s20 }
 0xec7   :  { %v2379_v23 = vpop.xlane.xlu1 %2378 }
 0xec8   :  { %v2381_v24 = vsub.f32 %v2371_v52, %v2379_v23 }
 0xec9   :  { %v2376_v30 = vpop.xlane.xlu0 %2375 }
 0xeca   :  { %v2384_v31 = vmul.f32 1.442695, %v2381_v24  ;;  %v2380_v32 = vsub.f32 %v2366_v60, %v2376_v30 }
 0xecb   :  { %v2399_v33 = vpop.permute.xlu1 %2398 }
 0xecc   :  { %4616 = vpow2.f32 %v2384_v31  ;;  %v2382_v34 = vmul.f32 1.442695, %v2380_v32 }
 0xecd   :  { %v2401_v35 = vpop.permute.xlu0 %2400 }
 0xece   :  { %4618 = vpow2.f32 %v2382_v34  ;;  %4339 = vmatprep.subr.mxu1 %v2401_v35 }
 0xecf   :  { %4340 = vmatpush3.msra.mxu1 %v2401_v35  ;;  %v2492_v17 = vpop.permute.xlu1 %2491 }
 0xed0   :  { %4341 = vmatprep.subr.mxu1 %v2399_v33 }
 0xed1   :  { %4342 = vmatpush3.msra.mxu1 %v2399_v33 }
 0xed2   :  { %4346 = vmatprep.subr.msk.mxu1 %vm341_vm0, %v2492_v17 }
 0xed3   :  { %v2490_v39 = vpop.permute.xlu1 %2489 }
 0xed7   :  { %v2692_v40 = vpop.permute.xlu1 %2691 }
 0xed9   :  { %v4617_v47 = vpop.eup %4616 }
 0xeda   :  { %v2389_v36 = vsel %vm341_vm0, %v4617_v47, 0.0 }
 0xedb   :  { %v4619_v37 = vpop.eup %4618  ;;  %2390 = vadd.xlane.f32.xlu0 %v2389_v36  ;;  %v2488_v41 = vpop.permute.xlu1 %2487 }
 0xedc   :  { %v2386_v38 = vsel %vm341_vm0, %v4619_v37, 0.0 }
 0xedf   :  { %2387 = vadd.xlane.f32.xlu0 %v2386_v38 }
 0xef5   :  { %2485 = vrot.lane.b32.xlu0 %v5152_v0, %s4800_s19 }
 0xf0c   :  { %v1830_v42 = vpop.xlane.xlu1 %1829 }
 0xf0d   :  { %v1832_v43 = vsub.f32 %v1822_v18, %v1830_v42 }
 0xf0f   :  { %v1835_v3 = vmul.f32 1.442695, %v1832_v43 }
 0xf11   :  { %4620 = vpow2.f32 %v1835_v3 }
 0xf14   :  { %1826 = vmax.xlane.f32.xlu0 %v1825_v63 }
 0xf1e   :  { %v5246_v8 = vpop.eup %4620 }
 0xf1f   :  { %v1840_v50 = vsel %vm341_vm0, %v5246_v8, 0.0 }
 0xf20   :  { %1841 = vadd.xlane.f32.xlu1 %v1840_v50  ;;  %v5297_v50 = vld [vmem:[#allocation8 + $0x70] sm:$0xff] }
 0xf2a   :  { %2689 = vrot.lane.b32.xlu0 %v5156_v15, %s4801_s20 }
 0xf2e   :  { %2687 = vrot.lane.b32.xlu0 %v5169_v45, %s4801_s20 }
 0xf31   :  { %1847 = vrot.lane.b32.xlu1 %v4912_v9, %s4805_s24  ;;  %v2686_v9 = vpop.permute.xlu1 %2685 }
 0xf64   :  { %v2391_v16 = vpop.xlane.xlu0 %2390 }
 0xf65   :  { %4622 = vrcp.f32 %v2391_v16  ;;  %v5301_v16 = vld [vmem:[#allocation8 + $0x68] sm:$0xff] }
 0xf68   :  { %v2388_v4 = vpop.xlane.xlu0 %2387 }
 0xf69   :  { %4624 = vrcp.f32 %v2388_v4  ;;  %v5305_v4 = vld [vmem:[#allocation8 + $0x60] sm:$0xff] }
 0xf6c   :  { %v2486_v61 = vpop.permute.xlu0 %2485 }
 0xf72   :  { %v4623_v53 = vpop.eup %4622 }
 0xf73   :  { %v2395_v52 = vmul.f32 %v4623_v53, %v4617_v47  ;;  %v5278_v47 = vld [vmem:[#allocation8 + $0x78] sm:$0xff]  ;;  %v5313_v53 = vld [vmem:[#allocation8 + $0x50] sm:$0xff] }
 0xf76   :  { %v4625_v54 = vpop.eup %4624 }
 0xf77   :  { %v2394_v57 = vmul.f32 %v4625_v54, %v4619_v37  ;;  %v5317_v54 = vld [vmem:[#allocation8 + $0x48] sm:$0xff] }
 0xf79   :  { %4343 = vmatprep.mubr.msk.f32.mxu1 %vm341_vm0, %v2394_v57  ;;  %v5325_v57 = vld [vmem:[#allocation8 + $0x40] sm:$0xff] }
 0xf7a   :  { %4344 = vmatmul.mubr.msk.f32.vlgmr.msra.gmra.mxu1 %vm341_vm0, %v2395_v52  ;;  %v4492_v52 = vpack.i.bf16 %v5109_v25, %v5111_v26  ;;  %v5352_v25 = vld [vmem:[#allocation8 + $0x18] sm:$0xff]  ;;  %v5370_v26 = vld [vmem:[#allocation8] sm:$0xff] }
 0xf7b   :  { %4347 = vmatpush3.xpose.msk.msra.mxu1 %vm341_vm0, %v2492_v17  ;;  %4350 = vmatprep.mubr.msk.f32.mxu1 %vm341_vm0, %v2486_v61  ;;  %v5331_v61 = vld [vmem:[#allocation8 + $0x38] sm:$0xff] }
 0xf7c   :  { %4348 = vmatprep.subr.msk.mxu1 %vm341_vm0, %v2490_v39 }
 0xf7f   :  { %4349 = vmatpush3.xpose.msk.msra.mxu1 %vm341_vm0, %v2490_v39  ;;  %v5286_v39 = vld [vmem:[#allocation5] sm:$0xff] }
 0xf80   :  { %4360 = vmatprep.subr.msk.mxu1 %vm341_vm0, %v2692_v40 }
 0xf82   :  { %4351 = vmatmul.mubr.msk.f32.vlgmr.msra.gmra.mxu1 %vm341_vm0, %v2488_v41 }
 0xf83   :  { %4361 = vmatpush3.xpose.msk.msra.mxu1 %vm341_vm0, %v2692_v40  ;;  %4364 = vmatprep.mubr.msk.f32.mxu1 %vm341_vm0, %v2686_v9 }
 0xf9d   :  { %v1827_v60 = vpop.xlane.xlu0 %1826 }
 0xf9e   :  { %v1831_v1 = vsub.f32 %v1817_v44, %v1827_v60 }
 0xfa0   :  { %v1833_v14 = vmul.f32 1.442695, %v1831_v1 }
 0xfa1   :  { %v2690_v18 = vpop.permute.xlu0 %2689 }
 0xfa2   :  { %4626 = vpow2.f32 %v1833_v14  ;;  %4362 = vmatprep.subr.msk.mxu1 %vm341_vm0, %v2690_v18 }
 0xfa3   :  { %4363 = vmatpush3.xpose.msk.msra.mxu1 %vm341_vm0, %v2690_v18 }
 0xfa5   :  { %v2688_v20 = vpop.permute.xlu0 %2687 }
 0xfa6   :  { %4365 = vmatmul.mubr.msk.f32.vlgmr.msra.gmra.mxu1 %vm341_vm0, %v2688_v20 }
 0xfa9   :  { %v1842_v30 = vpop.xlane.xlu1 %1841 }
 0xfaa   :  { %4628 = vrcp.f32 %v1842_v30 }
 0xfad   :  { %v1848_v17 = vpop.permute.xlu1 %1847 }
 0xfaf   :  { %v4627_v23 = vpop.eup %4626 }
 0xfb0   :  { %v1837_v24 = vsel %vm341_vm0, %v4627_v23, 0.0 }
 0xfb1   :  { %1838 = vadd.xlane.f32.xlu0 %v1837_v24 }
 0xfb7   :  { %v4629_v42 = vpop.eup %4628 }
 0xfb8   :  { %v1846_v63 = vmul.f32 %v4629_v42, %v5246_v8  ;;  %v5309_v8 = vld [vmem:[#allocation8 + $0x58] sm:$0xff] }
 0xfc7   :  { %1849 = vrot.lane.b32.xlu0 %v4902_v6, %s4805_s24  ;;  %v5280_v6 = vld [vmem:[#allocation5 + $0x8] sm:$0xff] }
0x103a   :  { %v5272_v31 = vpop.f32.mrf.mxu1  ;;  %v1839_v32 = vpop.xlane.xlu0 %1838 }
0x103b   :  { %4630 = vrcp.f32 %v1839_v32 }
0x103c   :  { %v5274_v33 = vpop.f32.mrf.mxu1 }
0x103d   :  { %v4517_v34 = vpack.i.bf16 %v5272_v31, %v5274_v33 }
0x103e   :  { %v1850_v35 = vpop.permute.xlu0 %1849 }
0x103f   :  { %4276 = vmatprep.subr.mxu0 %v1850_v35 }
0x1040   :  { %4277 = vmatpush3.msra.mxu0 %v1850_v35 }
0x1041   :  { %4278 = vmatprep.subr.mxu0 %v1848_v17 }
0x1042   :  { %v4352_v36 = vpop.f32.mrf.mxu1  ;;  %4279 = vmatpush3.msra.mxu0 %v1848_v17 }
0x1043   :  { %v5283_v37 = vadd.f32 %v5280_v6, %v4352_v36  ;;  %4283 = vmatprep.subr.mxu0 %v5278_v47 }
0x1044   :  { %v2567_v38 = vpop.f32.mrf.mxu1 }
0x1045   :  { %v5289_v40 = vadd.f32 %v5286_v39, %v2567_v38  ;;  %v2579_v41 = vsel %vm341_vm0, %v5283_v37, -inf }
0x1046   :  { %2580 = vmax.xlane.f32.xlu1 %v2579_v41 }
0x1047   :  { %v2576_v43 = vsel %vm341_vm0, %v5289_v40, -inf }
0x1048   :  { %v4631_v44 = vpop.eup %4630  ;;  %2577 = vmax.xlane.f32.xlu0 %v2576_v43 }
0x1049   :  { %v1845_v3 = vmul.f32 %v4631_v44, %v4627_v23 }
0x104b   :  { %4280 = vmatprep.mubr.msk.f32.mxu0 %vm341_vm0, %v1845_v3 }
0x104c   :  { %4281 = vmatmul.mubr.msk.f32.vlgmr.msra.gmra.mxu0 %vm341_vm0, %v1846_v63 }
0x104d   :  { %4284 = vmatpush3.msra.mxu0 %v5278_v47 }
0x104e   :  { %4285 = vmatprep.subr.mxu0 %v5297_v50 }
0x104f   :  { %4286 = vmatpush3.msra.mxu0 %v5297_v50 }
0x1050   :  { %4287 = vmatprep.subr.mxu0 %v5301_v16 }
0x1051   :  { %4288 = vmatpush3.msra.mxu0 %v5301_v16 }
0x1052   :  { %4289 = vmatprep.subr.mxu0 %v5305_v4 }
0x1053   :  { %4290 = vmatpush3.msra.mxu0 %v5305_v4 }
0x1054   :  { %4291 = vmatprep.subr.mxu0 %v5309_v8 }
0x1055   :  { %4292 = vmatpush3.msra.mxu0 %v5309_v8 }
0x1056   :  { %4293 = vmatprep.subr.mxu0 %v5313_v53 }
0x1057   :  { %4488 = vrot.lane.b32.xlu1 %v4487_v13, %s4804_s23  ;;  %4294 = vmatpush3.msra.mxu0 %v5313_v53  ;;  %v5348_v13 = vld [vmem:[#allocation8 + $0x20] sm:$0xff] }
0x1058   :  { %4295 = vmatprep.subr.mxu0 %v5317_v54 }
0x1059   :  { %4296 = vmatpush3.msra.mxu0 %v5317_v54 }
0x105a   :  { %4297 = vmatprep.subr.mxu0 %v5325_v57 }
0x105b   :  { %4493 = vrot.lane.b32.xlu1 %v4492_v52, %s4803_s22  ;;  %4298 = vmatpush3.msra.mxu0 %v5325_v57 }
0x105c   :  { %4299 = vmatprep.subr.mxu0 %v5331_v61 }
0x105d   :  { %4300 = vmatpush3.msra.mxu0 %v5331_v61 }
0x105e   :  { %4301 = vmatprep.subr.mxu0 %v5336_v10 }
0x105f   :  { %4498 = vrot.lane.b32.xlu1 %v4497_v22, %s4802_s21  ;;  %4302 = vmatpush3.msra.mxu0 %v5336_v10 }
0x1060   :  { %4303 = vmatprep.subr.mxu0 %v5340_v12 }
0x1061   :  { %4304 = vmatpush3.msra.mxu0 %v5340_v12 }
0x1062   :  { %4305 = vmatprep.subr.mxu0 %v5348_v13 }
0x1063   :  { %4508 = vrot.lane.b32.xlu1 %v4507_v58, %s4800_s19  ;;  %4306 = vmatpush3.msra.mxu0 %v5348_v13 }
0x1064   :  { %4307 = vmatprep.subr.mxu0 %v5352_v25 }
0x1065   :  { %4308 = vmatpush3.msra.mxu0 %v5352_v25 }
0x1066   :  { %v4366_v22 = vpop.f32.mrf.mxu1  ;;  %4309 = vmatprep.subr.mxu0 %v5360_v19 }
0x1067   :  { %2600 = vrot.lane.b32.xlu1 %v4921_v11, %s4800_s19  ;;  %4310 = vmatpush3.msra.mxu0 %v5360_v19  ;;  %v2773_v58 = vadd.f32 %v5280_v6, %v4366_v22 }
0x1068   :  { %v2767_v46 = vpop.f32.mrf.mxu1  ;;  %4311 = vmatprep.subr.mxu0 %v5364_v21 }
0x1069   :  { %v5374_v48 = vadd.f32 %v5286_v39, %v2767_v46  ;;  %4312 = vmatpush3.msra.mxu0 %v5364_v21  ;;  %v2779_v60 = vsel %vm341_vm0, %v2773_v58, -inf }
0x106a   :  { %4313 = vmatprep.subr.mxu0 %v5370_v26 }
0x106b   :  { %2800 = vrot.lane.b32.xlu1 %v4921_v11, %s4801_s20  ;;  %v2776_v9 = vsel %vm341_vm0, %v5374_v48, -inf  ;;  %4314 = vmatpush3.msra.mxu0 %v5370_v26 }
0x106c   :  { %2777 = vmax.xlane.f32.xlu0 %v2776_v9 }
0x1070   :  { %2780 = vmax.xlane.f32.xlu0 %v2779_v60 }
0x1086   :  { %4483 = vrot.lane.b32.xlu0 %v4482_v7, %s4805_s24 }
0x108a   :  { %4503 = vrot.lane.b32.xlu0 %v4502_v29, %s4801_s20 }
0x10cf   :  { %v2581_v1 = vpop.xlane.xlu1 %2580 }
0x10d0   :  { %v2583_v14 = vsub.f32 %v5283_v37, %v2581_v1 }
0x10d1   :  { %v2578_v7 = vpop.xlane.xlu0 %2577 }
0x10d2   :  { %v2586_v18 = vmul.f32 1.442695, %v2583_v14 }
0x10d3   :  { %v4489_v20 = vpop.permute.xlu1 %4488 }
0x10d4   :  { %4632 = vpow2.f32 %v2586_v18  ;;  %v4491_v38 = vunpack.i.h.bf16 %v4489_v20  ;;  %v4490_v41 = vunpack.i.l.bf16 %v4489_v20 }
0x10d7   :  { %v4494_v23 = vpop.permute.xlu1 %4493 }
0x10d8   :  { %v4496_v42 = vunpack.i.h.bf16 %v4494_v23  ;;  %v4495_v43 = vunpack.i.l.bf16 %v4494_v23 }
0x10db   :  { %v4499_v24 = vpop.permute.xlu1 %4498 }
0x10dc   :  { %v4501_v63 = vunpack.i.h.bf16 %v4499_v24  ;;  %v4500_v52 = vunpack.i.l.bf16 %v4499_v24 }
0x10df   :  { %v4509_v30 = vpop.permute.xlu1 %4508 }
0x10e0   :  { %v4511_v18 = vunpack.i.h.bf16 %v4509_v30  ;;  %v4510_v20 = vunpack.i.l.bf16 %v4509_v30  ;;  %v2582_v30 = vsub.f32 %v5289_v40, %v2578_v7 }
0x10e1   :  { %v5394_v32 = vpop.eup %4632 }
0x10e2   :  { %v2591_v2 = vsel %vm341_vm0, %v5394_v32, 0.0 }
0x10e3   :  { %2592 = vadd.xlane.f32.xlu1 %v2591_v2  ;;  %v5398_v5 = vpop.permute.xlu1 %2600 }
0x10e4   :  { %4353 = vmatprep.subr.mxu0 %v5398_v5 }
0x10f5   :  { %v2778_v27 = vpop.xlane.xlu0 %2777 }
0x10f9   :  { %v2781_v28 = vpop.xlane.xlu0 %2780 }
0x10fa   :  { %v2783_v29 = vsub.f32 %v2773_v58, %v2781_v28 }
0x10fc   :  { %v2786_v35 = vmul.f32 1.442695, %v2783_v29 }
0x10fd   :  { %v4484_v17 = vpop.permute.xlu0 %4483 }
0x10fe   :  { %4634 = vpow2.f32 %v2786_v35  ;;  %v4486_v36 = vunpack.i.h.bf16 %v4484_v17  ;;  %v4485_v37 = vunpack.i.l.bf16 %v4484_v17 }
0x1100   :  { %v1991_v44 = vsel %vm341_vm0, %v4967_v49, %v4486_v36  ;;  %v1990_v3 = vsel %vm341_vm0, %v4969_v51, %v4485_v37 }
0x1101   :  { %v1994_v22 = vsel %vm1992_vm1, %v1991_v44, %v4491_v38  ;;  %v1993_v46 = vsel %vm1992_vm1, %v1990_v3, %v4490_v41  ;;  %v4504_v58 = vpop.permute.xlu0 %4503  ;;  %v2584_v38 = vmul.f32 1.442695, %v2582_v30  ;;  %v2782_v41 = vsub.f32 %v5374_v48, %v2778_v27 }
0x1102   :  { %v4506_v9 = vunpack.i.h.bf16 %v4504_v58  ;;  %v4505_v60 = vunpack.i.l.bf16 %v4504_v58  ;;  %v1997_v1 = vsel %vm1995_vm2, %v1994_v22, %v4496_v42  ;;  %v1996_v14 = vsel %vm1995_vm2, %v1993_v46, %v4495_v43  ;;  %v2801_v46 = vpop.permute.xlu1 %2800 }
0x1103   :  { %v2000_v49 = vsel %vm1998_vm3, %v1997_v1, %v4501_v63  ;;  %v1999_v23 = vsel %vm1998_vm3, %v1996_v14, %v4500_v52  ;;  %4636 = vpow2.f32 %v2584_v38  ;;  %v2784_v42 = vmul.f32 1.442695, %v2782_v41 }
0x1104   :  { %v2003_v51 = vsel %vm2001_vm4, %v2000_v49, %v4506_v9  ;;  %v2002_v24 = vsel %vm2001_vm4, %v1999_v23, %v4505_v60 }
0x1105   :  { %v2005_v2 = vsel %vm2004_vm5, %v2002_v24, %v4510_v20  ;;  %v2006_v28 = vsel %vm2004_vm5, %v2003_v51, %v4511_v18  ;;  %4638 = vpow2.f32 %v2784_v42 }
0x110b   :  { %v4635_v29 = vpop.eup %4634 }
0x110c   :  { %v4282_v35 = vpop.f32.mrf.mxu0  ;;  %v2791_v17 = vsel %vm341_vm0, %v4635_v29, 0.0 }
0x110d   :  { %2792 = vadd.xlane.f32.xlu1 %v2791_v17 }
0x110e   :  { %v1925_v36 = vpop.f32.mrf.mxu0 }
0x110f   :  { %v4512_v37 = vpack.i.bf16 %v4282_v35, %v1925_v36 }
0x1110   :  { %v4637_v43 = vpop.eup %4636 }
0x1111   :  { %4513 = vrot.lane.b32.xlu0 %v4512_v37, %s4799_s3  ;;  %v2588_v44 = vsel %vm341_vm0, %v4637_v43, 0.0 }
0x1112   :  { %v4639_v3 = vpop.eup %4638 }
0x1113   :  { %v2788_v63 = vsel %vm341_vm0, %v4639_v3, 0.0 }
0x1115   :  { %2598 = vrot.lane.b32.xlu0 %v5174_v59, %s4800_s19 }
0x111e   :  { %2891 = vrot.lane.b32.xlu1 %v5145_v62, %s4802_s21 }
0x1122   :  { %2885 = vrot.lane.b32.xlu1 %v5152_v0, %s4802_s21 }
0x1134   :  { %2589 = vadd.xlane.f32.xlu0 %v2588_v44 }
0x1138   :  { %2789 = vadd.xlane.f32.xlu0 %v2788_v63 }
0x114e   :  { %2798 = vrot.lane.b32.xlu0 %v5174_v59, %s4801_s20 }
0x1152   :  { %2889 = vrot.lane.b32.xlu0 %v5156_v15, %s4802_s21 }
0x1156   :  { %2887 = vrot.lane.b32.xlu0 %v5169_v45, %s4802_s21 }
0x116c   :  { %v2593_v58 = vpop.xlane.xlu1 %2592 }
0x116d   :  { %4640 = vrcp.f32 %v2593_v58 }
0x117a   :  { %v4641_v14 = vpop.eup %4640 }
0x117b   :  { %v2597_v23 = vmul.f32 %v4641_v14, %v5394_v32 }
0x1183   :  { %v4514_v40 = vpop.permute.xlu0 %4513 }
0x1184   :  { %v4516_v48 = vunpack.i.h.bf16 %v4514_v40  ;;  %v4515_v7 = vunpack.i.l.bf16 %v4514_v40 }
0x1186   :  { %v2008_v27 = vsel %vm2007_vm6, %v2005_v2, %v4515_v7  ;;  %v2009_v52 = vsel %vm2007_vm6, %v2006_v28, %v4516_v48 }
0x1187   :  { %v2599_v22 = vpop.permute.xlu0 %2598  ;;  %4315 = vmatprep.mubr.f32.mxu0 %v2008_v27 }
0x1188   :  { %4316 = vmatmul.mubr.f32.vlgmr.msra.gmra.mxu0 %v2009_v52 }
0x1189   :  { %4354 = vmatpush3.msra.mxu0 %v5398_v5 }
0x118a   :  { %4355 = vmatprep.subr.mxu0 %v2599_v22 }
0x118b   :  { %4356 = vmatpush3.msra.mxu0 %v2599_v22 }
0x118c   :  { %4367 = vmatprep.subr.mxu0 %v2801_v46 }
0x1196   :  { %v2793_v60 = vpop.xlane.xlu1 %2792 }
0x119a   :  { %v2892_v49 = vpop.permute.xlu1 %2891 }
0x119e   :  { %v2886_v35 = vpop.permute.xlu1 %2885 }
0x11bd   :  { %v2590_v9 = vpop.xlane.xlu0 %2589 }
0x11be   :  { %4642 = vrcp.f32 %v2590_v9 }
0x11bf   :  { %4644 = vrcp.f32 %v2793_v60 }
0x11c1   :  { %v2790_v1 = vpop.xlane.xlu0 %2789 }
0x11c2   :  { %4646 = vrcp.f32 %v2790_v1 }
0x11c5   :  { %v2799_v5 = vpop.permute.xlu0 %2798 }
0x11c9   :  { %v2890_v32 = vpop.permute.xlu0 %2889 }
0x11cb   :  { %v4643_v18 = vpop.eup %4642 }
0x11cc   :  { %v2596_v20 = vmul.f32 %v4643_v18, %v4637_v43  ;;  %v4645_v51 = vpop.eup %4644 }
0x11cd   :  { %v2797_v28 = vmul.f32 %v4645_v51, %v4635_v29  ;;  %v2888_v17 = vpop.permute.xlu0 %2887  ;;  %v5450_v29 = vld [vmem:[%s5651_s5] ss:$0 sm:$0xff]  ;;  %s4806_s5 = smov [#allocation10]  }
0x11ce   :  { %4357 = vmatprep.mubr.msk.f32.mxu0 %vm341_vm0, %v2596_v20  ;;  %s3838_s29 = sshll.u32 %s4806_s5, 4  ;;  %s3839_s29 = int_to_ptr.vmem [resolvable:$true] %s3838_s29 }
0x11cf   :  { %v4647_v24 = vpop.eup %4646  ;;  %4358 = vmatmul.mubr.msk.f32.vlgmr.msra.gmra.mxu0 %vm341_vm0, %v2597_v23  ;;  %s4762_s30 = scalar_lea.vmem %s3839_s29, 512  ;;  %p4767_p7 = scmp.lt.s32.totalorder %s3839_s29, %s3839_s29 }
0x11d0   :  { %4368 = vmatpush3.msra.mxu0 %v2801_v46  ;;  %v2796_v2 = vmul.f32 %v4647_v24, %v4639_v3  ;;  %p4763_p6 = scmp.ne.s32.totalorder %s3839_s29, %s4762_s30  ;;  %p4768_p8 = scmp.lt.s32.totalorder %s4762_s30, %s4762_s30 }
0x11d1   :  { %4369 = vmatprep.subr.mxu0 %v2799_v5 }
0x11d2   :  { %4370 = vmatpush3.msra.mxu0 %v2799_v5  ;;  %4371 = vmatprep.mubr.msk.f32.mxu0 %vm341_vm0, %v2796_v2  ;;  %p4769_p9 = por %p4768_p8, %p4767_p7 }
0x11d3   :  { %4374 = vmatprep.subr.msk.mxu0 %vm341_vm0, %v2892_v49  ;;  %4372 = vmatmul.mubr.msk.f32.vlgmr.msra.gmra.mxu0 %vm341_vm0, %v2797_v28 }
0x11d4   :  { %4375 = vmatpush3.xpose.msk.msra.mxu0 %vm341_vm0, %v2892_v49  ;;  %4378 = vmatprep.mubr.msk.f32.mxu0 %vm341_vm0, %v2886_v35  ;;  %p4770_p10 = pnand %p4769_p9, %p4763_p6 }
0x11d5   :  { %4376 = vmatprep.subr.msk.mxu0 %vm341_vm0, %v2890_v32 }
0x11d8   :  { %4377 = vmatpush3.xpose.msk.msra.mxu0 %vm341_vm0, %v2890_v32 }
0x11db   :  { %4379 = vmatmul.mubr.msk.f32.vlgmr.msra.gmra.mxu0 %vm341_vm0, %v2888_v17 }
0x1248   :  { %v4317_v36 = vpop.f32.mrf.mxu0 }
0x1249   :  { %v2088_v37 = vadd.f32 %v4317_v36, %v5450_v29 }
0x124a   :  { %v2082_v30 = vpop.f32.mrf.mxu0 }
0x124b   :  { %2092 = vst [vmem:[#allocation10 + $0x8] sm:$0xff] %v2088_v37  ;;  %v2083_v38 = vadd.f32 %v5450_v29, %v2082_v30 }
0x124d   :  { %2091 = vst [vmem:[#allocation10] sm:$0xff] %v2083_v38 }
0x128f   :  { %v5454_v41 = vpop.f32.mrf.mxu0 }
0x1291   :  { %v5456_v42 = vpop.f32.mrf.mxu0 }
0x1292   :  { %v4522_v43 = vpack.i.bf16 %v5454_v41, %v5456_v42 }
0x1293   :  { %v5460_v44 = vpop.f32.mrf.mxu0 }
0x1295   :  { %v5462_v3 = vpop.f32.mrf.mxu0 }
0x1296   :  { %v4527_v63 = vpack.i.bf16 %v5460_v44, %v5462_v3 }
0x129b   :  { %v4380_v40 = vpop.f32.mrf.mxu0 }
0x129c   :  { %v2973_v48 = vadd.f32 %v5280_v6, %v4380_v40 }
0x129d   :  { %v2967_v7 = vpop.f32.mrf.mxu0 }
0x129e   :  { %v2968_v27 = vadd.f32 %v5286_v39, %v2967_v7  ;;  %v2979_v52 = vsel %vm341_vm0, %v2973_v48, -inf }
0x129f   :  { %2980 = vmax.xlane.f32.xlu0 %v2979_v52 }
0x12a0   :  { %v2976_v22 = vsel %vm341_vm0, %v2968_v27, -inf }
0x12a1   :  { %2977 = vmax.xlane.f32.xlu1 %v2976_v22 }
0x12b2   :  { %3000 = vrot.lane.b32.xlu1 %v4921_v11, %s4802_s21 }
0x12b6   :  { %3091 = vrot.lane.b32.xlu1 %v5145_v62, %s4803_s22 }
0x12ba   :  { %3089 = vrot.lane.b32.xlu1 %v5156_v15, %s4803_s22 }
0x12be   :  { %3085 = vrot.lane.b32.xlu1 %v5152_v0, %s4803_s22 }
0x1328   :  { %v2981_v46 = vpop.xlane.xlu0 %2980 }
0x1329   :  { %v2983_v58 = vsub.f32 %v2973_v48, %v2981_v46 }
0x132a   :  { %v2978_v9 = vpop.xlane.xlu1 %2977 }
0x132b   :  { %v2986_v60 = vmul.f32 1.442695, %v2983_v58  ;;  %v2982_v1 = vsub.f32 %v2968_v27, %v2978_v9 }
0x132d   :  { %4648 = vpow2.f32 %v2986_v60  ;;  %v2984_v14 = vmul.f32 1.442695, %v2982_v1 }
0x132e   :  { %v3001_v18 = vpop.permute.xlu1 %3000 }
0x132f   :  { %4650 = vpow2.f32 %v2984_v14  ;;  %4381 = vmatprep.subr.mxu1 %v3001_v18 }
0x1330   :  { %4382 = vmatpush3.msra.mxu1 %v3001_v18 }
0x1332   :  { %v3092_v28 = vpop.permute.xlu1 %3091 }
0x1336   :  { %v3090_v35 = vpop.permute.xlu1 %3089 }
0x133a   :  { %v4649_v20 = vpop.eup %4648  ;;  %v3086_v30 = vpop.permute.xlu1 %3085 }
0x133b   :  { %v2991_v49 = vsel %vm341_vm0, %v4649_v20, 0.0 }
0x133c   :  { %v4651_v23 = vpop.eup %4650  ;;  %2992 = vadd.xlane.f32.xlu0 %v2991_v49 }
0x133d   :  { %v2988_v51 = vsel %vm341_vm0, %v4651_v23, 0.0 }
0x1340   :  { %2989 = vadd.xlane.f32.xlu0 %v2988_v51 }
0x1356   :  { %2998 = vrot.lane.b32.xlu0 %v5174_v59, %s4802_s21 }
0x135a   :  { %3087 = vrot.lane.b32.xlu0 %v5169_v45, %s4803_s22 }
0x13c5   :  { %v2993_v5 = vpop.xlane.xlu0 %2992 }
0x13c6   :  { %4652 = vrcp.f32 %v2993_v5 }
0x13c9   :  { %v2990_v24 = vpop.xlane.xlu0 %2989 }
0x13ca   :  { %4654 = vrcp.f32 %v2990_v24 }
0x13cd   :  { %v2999_v2 = vpop.permute.xlu0 %2998 }
0x13ce   :  { %4383 = vmatprep.subr.mxu1 %v2999_v2 }
0x13cf   :  { %4384 = vmatpush3.msra.mxu1 %v2999_v2 }
0x13d0   :  { %4388 = vmatprep.subr.msk.mxu1 %vm341_vm0, %v3092_v28 }
0x13d1   :  { %v3088_v38 = vpop.permute.xlu0 %3087 }
0x13d3   :  { %v4653_v32 = vpop.eup %4652 }
0x13d4   :  { %v2997_v37 = vmul.f32 %v4653_v32, %v4649_v20 }
0x13d7   :  { %v4655_v17 = vpop.eup %4654 }
0x13d8   :  { %v2996_v36 = vmul.f32 %v4655_v17, %v4651_v23 }
0x13da   :  { %4385 = vmatprep.mubr.msk.f32.mxu1 %vm341_vm0, %v2996_v36 }
0x13db   :  { %4386 = vmatmul.mubr.msk.f32.vlgmr.msra.gmra.mxu1 %vm341_vm0, %v2997_v37 }
0x13dc   :  { %4389 = vmatpush3.xpose.msk.msra.mxu1 %vm341_vm0, %v3092_v28  ;;  %4392 = vmatprep.mubr.msk.f32.mxu1 %vm341_vm0, %v3086_v30 }
0x13dd   :  { %4390 = vmatprep.subr.msk.mxu1 %vm341_vm0, %v3090_v35 }
0x13e0   :  { %4391 = vmatpush3.xpose.msk.msra.mxu1 %vm341_vm0, %v3090_v35 }
0x13e3   :  { %4393 = vmatmul.mubr.msk.f32.vlgmr.msra.gmra.mxu1 %vm341_vm0, %v3088_v38 }
0x149b   :  { %v5492_v40 = vpop.f32.mrf.mxu1 }
0x149d   :  { %v5494_v48 = vpop.f32.mrf.mxu1 }
0x149e   :  { %v4532_v7 = vpack.i.bf16 %v5492_v40, %v5494_v48 }
0x14a3   :  { %v4394_v27 = vpop.f32.mrf.mxu1 }
0x14a4   :  { %v3173_v52 = vadd.f32 %v5280_v6, %v4394_v27 }
0x14a5   :  { %v3167_v22 = vpop.f32.mrf.mxu1 }
0x14a6   :  { %v3168_v46 = vadd.f32 %v5286_v39, %v3167_v22  ;;  %v3179_v58 = vsel %vm341_vm0, %v3173_v52, -inf }
0x14a7   :  { %3180 = vmax.xlane.f32.xlu0 %v3179_v58 }
0x14a8   :  { %v3176_v9 = vsel %vm341_vm0, %v3168_v46, -inf }
0x14a9   :  { %3177 = vmax.xlane.f32.xlu1 %v3176_v9 }
0x14ba   :  { %3200 = vrot.lane.b32.xlu1 %v4921_v11, %s4803_s22 }
0x14be   :  { %3291 = vrot.lane.b32.xlu1 %v5145_v62, %s4804_s23 }
0x14c2   :  { %3289 = vrot.lane.b32.xlu1 %v5156_v15, %s4804_s23 }
0x14c6   :  { %3285 = vrot.lane.b32.xlu1 %v5152_v0, %s4804_s23 }
0x1530   :  { %v3181_v60 = vpop.xlane.xlu0 %3180 }
0x1531   :  { %v3183_v1 = vsub.f32 %v3173_v52, %v3181_v60 }
0x1532   :  { %v3178_v14 = vpop.xlane.xlu1 %3177 }
0x1533   :  { %v3186_v18 = vmul.f32 1.442695, %v3183_v1  ;;  %v3182_v20 = vsub.f32 %v3168_v46, %v3178_v14 }
0x1535   :  { %4656 = vpow2.f32 %v3186_v18  ;;  %v3184_v49 = vmul.f32 1.442695, %v3182_v20 }
0x1536   :  { %v3201_v23 = vpop.permute.xlu1 %3200 }
0x1537   :  { %4658 = vpow2.f32 %v3184_v49  ;;  %4395 = vmatprep.subr.mxu0 %v3201_v23 }
0x1538   :  { %4396 = vmatpush3.msra.mxu0 %v3201_v23 }
0x153a   :  { %v3292_v17 = vpop.permute.xlu1 %3291 }
0x153e   :  { %v3290_v36 = vpop.permute.xlu1 %3289 }
0x1542   :  { %v4657_v51 = vpop.eup %4656  ;;  %v3286_v52 = vpop.permute.xlu1 %3285 }
0x1543   :  { %v3191_v5 = vsel %vm341_vm0, %v4657_v51, 0.0 }
0x1544   :  { %v4659_v24 = vpop.eup %4658  ;;  %3192 = vadd.xlane.f32.xlu0 %v3191_v5 }
0x1545   :  { %v3188_v2 = vsel %vm341_vm0, %v4659_v24, 0.0 }
0x1548   :  { %3189 = vadd.xlane.f32.xlu0 %v3188_v2 }
0x155e   :  { %3198 = vrot.lane.b32.xlu0 %v5174_v59, %s4803_s22 }
0x1562   :  { %3287 = vrot.lane.b32.xlu0 %v5169_v45, %s4804_s23 }
0x15cd   :  { %v3193_v28 = vpop.xlane.xlu0 %3192 }
0x15ce   :  { %4660 = vrcp.f32 %v3193_v28 }
0x15d1   :  { %v3190_v35 = vpop.xlane.xlu0 %3189 }
0x15d2   :  { %4662 = vrcp.f32 %v3190_v35 }
0x15d5   :  { %v3199_v32 = vpop.permute.xlu0 %3198 }
0x15d6   :  { %4397 = vmatprep.subr.mxu0 %v3199_v32 }
0x15d7   :  { %4398 = vmatpush3.msra.mxu0 %v3199_v32 }
0x15d8   :  { %4402 = vmatprep.subr.msk.mxu0 %vm341_vm0, %v3292_v17 }
0x15d9   :  { %v3288_v22 = vpop.permute.xlu0 %3287 }
0x15db   :  { %v4661_v37 = vpop.eup %4660 }
0x15dc   :  { %v3197_v27 = vmul.f32 %v4661_v37, %v4657_v51 }
0x15df   :  { %v4663_v30 = vpop.eup %4662 }
0x15e0   :  { %v3196_v38 = vmul.f32 %v4663_v30, %v4659_v24 }
0x15e2   :  { %4399 = vmatprep.mubr.msk.f32.mxu0 %vm341_vm0, %v3196_v38 }
0x15e3   :  { %4400 = vmatmul.mubr.msk.f32.vlgmr.msra.gmra.mxu0 %vm341_vm0, %v3197_v27 }
0x15e4   :  { %4403 = vmatpush3.xpose.msk.msra.mxu0 %vm341_vm0, %v3292_v17  ;;  %4406 = vmatprep.mubr.msk.f32.mxu0 %vm341_vm0, %v3286_v52 }
0x15e5   :  { %4404 = vmatprep.subr.msk.mxu0 %vm341_vm0, %v3290_v36 }
0x15e8   :  { %4405 = vmatpush3.xpose.msk.msra.mxu0 %vm341_vm0, %v3290_v36 }
0x15eb   :  { %4407 = vmatmul.mubr.msk.f32.vlgmr.msra.gmra.mxu0 %vm341_vm0, %v3288_v22 }
0x16a3   :  { %v5524_v46 = vpop.f32.mrf.mxu0 }
0x16a5   :  { %v5526_v58 = vpop.f32.mrf.mxu0 }
0x16a6   :  { %v4537_v9 = vpack.i.bf16 %v5524_v46, %v5526_v58 }
0x16ab   :  { %v4408_v60 = vpop.f32.mrf.mxu0 }
0x16ac   :  { %v3373_v1 = vadd.f32 %v5280_v6, %v4408_v60 }
0x16ad   :  { %v3367_v14 = vpop.f32.mrf.mxu0 }
0x16ae   :  { %v3368_v18 = vadd.f32 %v5286_v39, %v3367_v14  ;;  %v3379_v20 = vsel %vm341_vm0, %v3373_v1, -inf }
0x16af   :  { %3380 = vmax.xlane.f32.xlu0 %v3379_v20 }
0x16b0   :  { %v3376_v49 = vsel %vm341_vm0, %v3368_v18, -inf }
0x16b1   :  { %3377 = vmax.xlane.f32.xlu1 %v3376_v49 }
0x16c2   :  { %3400 = vrot.lane.b32.xlu1 %v4921_v11, %s4804_s23 }
0x16c6   :  { %3491 = vrot.lane.b32.xlu1 %v5145_v62, %s4805_s24 }
0x16ca   :  { %3489 = vrot.lane.b32.xlu1 %v5156_v15, %s4805_s24 }
0x16ce   :  { %3485 = vrot.lane.b32.xlu1 %v5152_v0, %s4805_s24 }
0x1738   :  { %v3381_v23 = vpop.xlane.xlu0 %3380 }
0x1739   :  { %v3383_v51 = vsub.f32 %v3373_v1, %v3381_v23 }
0x173a   :  { %v3378_v5 = vpop.xlane.xlu1 %3377 }
0x173b   :  { %v3386_v24 = vmul.f32 1.442695, %v3383_v51  ;;  %v3382_v2 = vsub.f32 %v3368_v18, %v3378_v5 }
0x173d   :  { %4664 = vpow2.f32 %v3386_v24  ;;  %v3384_v28 = vmul.f32 1.442695, %v3382_v2 }
0x173e   :  { %v3401_v35 = vpop.permute.xlu1 %3400 }
0x173f   :  { %4666 = vpow2.f32 %v3384_v28  ;;  %4409 = vmatprep.subr.mxu1 %v3401_v35 }
0x1740   :  { %4410 = vmatpush3.msra.mxu1 %v3401_v35 }
0x1742   :  { %v3492_v30 = vpop.permute.xlu1 %3491 }
0x1746   :  { %v3490_v38 = vpop.permute.xlu1 %3489 }
0x174a   :  { %v4665_v32 = vpop.eup %4664  ;;  %v3486_v1 = vpop.permute.xlu1 %3485 }
0x174b   :  { %v3391_v62 = vsel %vm341_vm0, %v4665_v32, 0.0 }
0x174c   :  { %v4667_v17 = vpop.eup %4666  ;;  %3392 = vadd.xlane.f32.xlu0 %v3391_v62 }
0x174d   :  { %v3388_v15 = vsel %vm341_vm0, %v4667_v17, 0.0 }
0x1750   :  { %3389 = vadd.xlane.f32.xlu0 %v3388_v15 }
0x1766   :  { %3398 = vrot.lane.b32.xlu0 %v5174_v59, %s4804_s23 }
0x176a   :  { %3487 = vrot.lane.b32.xlu0 %v5169_v45, %s4805_s24 }
0x17d5   :  { %v3393_v0 = vpop.xlane.xlu0 %3392 }
0x17d6   :  { %4668 = vrcp.f32 %v3393_v0 }
0x17d9   :  { %v3390_v36 = vpop.xlane.xlu0 %3389 }
0x17da   :  { %4670 = vrcp.f32 %v3390_v36 }
0x17dd   :  { %v3399_v37 = vpop.permute.xlu0 %3398 }
0x17de   :  { %4411 = vmatprep.subr.mxu1 %v3399_v37 }
0x17df   :  { %4412 = vmatpush3.msra.mxu1 %v3399_v37 }
0x17e0   :  { %4416 = vmatprep.subr.msk.mxu1 %vm341_vm0, %v3492_v30 }
0x17e1   :  { %v3488_v45 = vpop.permute.xlu0 %3487 }
0x17e3   :  { %v4669_v27 = vpop.eup %4668 }
0x17e4   :  { %v3397_v60 = vmul.f32 %v4669_v27, %v4665_v32 }
0x17e7   :  { %v4671_v52 = vpop.eup %4670 }
0x17e8   :  { %v3396_v22 = vmul.f32 %v4671_v52, %v4667_v17 }
0x17ea   :  { %4413 = vmatprep.mubr.msk.f32.mxu1 %vm341_vm0, %v3396_v22 }
0x17eb   :  { %4414 = vmatmul.mubr.msk.f32.vlgmr.msra.gmra.mxu1 %vm341_vm0, %v3397_v60 }
0x17ec   :  { %4417 = vmatpush3.xpose.msk.msra.mxu1 %vm341_vm0, %v3492_v30  ;;  %4420 = vmatprep.mubr.msk.f32.mxu1 %vm341_vm0, %v3486_v1 }
0x17ed   :  { %4418 = vmatprep.subr.msk.mxu1 %vm341_vm0, %v3490_v38 }
0x17f0   :  { %4419 = vmatpush3.xpose.msk.msra.mxu1 %vm341_vm0, %v3490_v38 }
0x17f3   :  { %4421 = vmatmul.mubr.msk.f32.vlgmr.msra.gmra.mxu1 %vm341_vm0, %v3488_v45 }
0x18ab   :  { %v4415_v14 = vpop.f32.mrf.mxu1 }
0x18ad   :  { %v3476_v18 = vpop.f32.mrf.mxu1 }
0x18ae   :  { %v4542_v20 = vpack.i.bf16 %v4415_v14, %v3476_v18 }
0x18b3   :  { %v4422_v49 = vpop.f32.mrf.mxu1 }
0x18b4   :  { %v3573_v23 = vadd.f32 %v5280_v6, %v4422_v49 }
0x18b5   :  { %v3567_v51 = vpop.f32.mrf.mxu1 }
0x18b6   :  { %v3568_v5 = vadd.f32 %v5286_v39, %v3567_v51  ;;  %v3579_v24 = vsel %vm341_vm0, %v3573_v23, -inf }
0x18b7   :  { %3580 = vmax.xlane.f32.xlu0 %v3579_v24 }
0x18b8   :  { %v3576_v2 = vsel %vm341_vm0, %v3568_v5, -inf }
0x18b9   :  { %3577 = vmax.xlane.f32.xlu1 %v3576_v2 }
0x18ca   :  { %3600 = vrot.lane.b32.xlu1 %v4921_v11, %s4805_s24 }
0x18ce   :  { %4518 = vrot.lane.b32.xlu1 %v4517_v34, %s4805_s24 }
0x18d2   :  { %4523 = vrot.lane.b32.xlu1 %v4522_v43, %s4804_s23 }
0x18d6   :  { %4528 = vrot.lane.b32.xlu1 %v4527_v63, %s4803_s22 }
0x18da   :  { %4538 = vrot.lane.b32.xlu1 %v4537_v9, %s4801_s20 }
0x1940   :  { %v3581_v11 = vpop.xlane.xlu0 %3580 }
0x1941   :  { %v3583_v6 = vsub.f32 %v3573_v23, %v3581_v11 }
0x1942   :  { %v3578_v39 = vpop.xlane.xlu1 %3577 }
0x1943   :  { %v3586_v31 = vmul.f32 1.442695, %v3583_v6  ;;  %v3582_v33 = vsub.f32 %v3568_v5, %v3578_v39 }
0x1945   :  { %4672 = vpow2.f32 %v3586_v31  ;;  %v3584_v34 = vmul.f32 1.442695, %v3582_v33 }
0x1946   :  { %v3601_v28 = vpop.permute.xlu1 %3600 }
0x1947   :  { %4674 = vpow2.f32 %v3584_v34  ;;  %4423 = vmatprep.subr.mxu0 %v3601_v28 }
0x1948   :  { %4424 = vmatpush3.msra.mxu0 %v3601_v28 }
0x1952   :  { %v4673_v41 = vpop.eup %4672 }
0x1953   :  { %v3591_v42 = vsel %vm341_vm0, %v4673_v41, 0.0 }
0x1954   :  { %v4675_v43 = vpop.eup %4674  ;;  %3592 = vadd.xlane.f32.xlu0 %v3591_v42 }
0x1955   :  { %v3588_v44 = vsel %vm341_vm0, %v4675_v43, 0.0 }
0x1958   :  { %3589 = vadd.xlane.f32.xlu0 %v3588_v44 }
0x196e   :  { %3598 = vrot.lane.b32.xlu0 %v5174_v59, %s4805_s24 }
0x1972   :  { %4533 = vrot.lane.b32.xlu0 %v4532_v7, %s4802_s21 }
0x1976   :  { %4543 = vrot.lane.b32.xlu0 %v4542_v20, %s4800_s19 }
0x19dd   :  { %v3593_v3 = vpop.xlane.xlu0 %3592 }
0x19de   :  { %4676 = vrcp.f32 %v3593_v3 }
0x19e1   :  { %v3590_v63 = vpop.xlane.xlu0 %3589 }
0x19e2   :  { %4678 = vrcp.f32 %v3590_v63 }
0x19e5   :  { %v3599_v46 = vpop.permute.xlu0 %3598 }
0x19e6   :  { %4425 = vmatprep.subr.mxu0 %v3599_v46 }
0x19e7   :  { %4426 = vmatpush3.msra.mxu0 %v3599_v46 }
0x19e8   :  { %4430 = vmatprep.subr.mxu0 %v5278_v47 }
0x19eb   :  { %v4677_v58 = vpop.eup %4676 }
0x19ec   :  { %v3597_v59 = vmul.f32 %v4677_v58, %v4673_v41 }
0x19ef   :  { %v4679_v9 = vpop.eup %4678 }
0x19f0   :  { %v3596_v35 = vmul.f32 %v4679_v9, %v4675_v43 }
0x19f2   :  { %4427 = vmatprep.mubr.msk.f32.mxu0 %vm341_vm0, %v3596_v35 }
0x19f3   :  { %4428 = vmatmul.mubr.msk.f32.vlgmr.msra.gmra.mxu0 %vm341_vm0, %v3597_v59 }
0x19f4   :  { %4431 = vmatpush3.msra.mxu0 %v5278_v47 }
0x19f5   :  { %4432 = vmatprep.subr.mxu0 %v5297_v50 }
0x19f6   :  { %4433 = vmatpush3.msra.mxu0 %v5297_v50 }
0x19f7   :  { %4434 = vmatprep.subr.mxu0 %v5301_v16 }
0x19f8   :  { %4435 = vmatpush3.msra.mxu0 %v5301_v16 }
0x19f9   :  { %4436 = vmatprep.subr.mxu0 %v5305_v4 }
0x19fa   :  { %4437 = vmatpush3.msra.mxu0 %v5305_v4  ;;  %v4519_v4 = vpop.permute.xlu1 %4518 }
0x19fb   :  { %4438 = vmatprep.subr.mxu0 %v5309_v8 }
0x19fc   :  { %4439 = vmatpush3.msra.mxu0 %v5309_v8 }
0x19fd   :  { %4440 = vmatprep.subr.mxu0 %v5313_v53 }
0x19fe   :  { %4441 = vmatpush3.msra.mxu0 %v5313_v53  ;;  %v4524_v8 = vpop.permute.xlu1 %4523  ;;  %v4534_v53 = vpop.permute.xlu0 %4533 }
0x19ff   :  { %4442 = vmatprep.subr.mxu0 %v5317_v54 }
0x1a00   :  { %4443 = vmatpush3.msra.mxu0 %v5317_v54 }
0x1a01   :  { %4444 = vmatprep.subr.mxu0 %v5325_v57 }
0x1a02   :  { %4445 = vmatpush3.msra.mxu0 %v5325_v57  ;;  %v4529_v54 = vpop.permute.xlu1 %4528  ;;  %v4521_v57 = vunpack.i.h.bf16 %v4519_v4  ;;  %v4544_v48 = vpop.permute.xlu0 %4543 }
0x1a03   :  { %4446 = vmatprep.subr.mxu0 %v5331_v61  ;;  %v4546_v37 = vunpack.i.h.bf16 %v4544_v48  ;;  %v4545_v30 = vunpack.i.l.bf16 %v4544_v48 }
0x1a04   :  { %4447 = vmatpush3.msra.mxu0 %v5331_v61  ;;  %v4520_v61 = vunpack.i.l.bf16 %v4519_v4 }
0x1a05   :  { %4448 = vmatprep.subr.mxu0 %v5336_v10 }
0x1a06   :  { %4449 = vmatpush3.msra.mxu0 %v5336_v10  ;;  %v4526_v10 = vunpack.i.h.bf16 %v4524_v8  ;;  %v3741_v40 = vsel %vm341_vm0, %v5215_v56, %v4520_v61  ;;  %v4539_v62 = vpop.permute.xlu1 %4538 }
0x1a07   :  { %4450 = vmatprep.subr.mxu0 %v5340_v12  ;;  %v4540_v38 = vunpack.i.l.bf16 %v4539_v62 }
0x1a08   :  { %4451 = vmatpush3.msra.mxu0 %v5340_v12  ;;  %v4525_v12 = vunpack.i.l.bf16 %v4524_v8 }
0x1a09   :  { %4452 = vmatprep.subr.mxu0 %v5348_v13 }
0x1a0a   :  { %4453 = vmatpush3.msra.mxu0 %v5348_v13  ;;  %v4531_v13 = vunpack.i.h.bf16 %v4529_v54  ;;  %v3743_v7 = vsel %vm1992_vm1, %v3741_v40, %v4525_v12 }
0x1a0b   :  { %4454 = vmatprep.subr.mxu0 %v5352_v25 }
0x1a0c   :  { %4455 = vmatpush3.msra.mxu0 %v5352_v25  ;;  %v4530_v25 = vunpack.i.l.bf16 %v4529_v54 }
0x1a0d   :  { %4456 = vmatprep.subr.mxu0 %v5360_v19 }
0x1a0e   :  { %4457 = vmatpush3.msra.mxu0 %v5360_v19  ;;  %v4536_v19 = vunpack.i.h.bf16 %v4534_v53  ;;  %v3745_v17 = vsel %vm1995_vm2, %v3743_v7, %v4530_v25 }
0x1a0f   :  { %4458 = vmatprep.subr.mxu0 %v5364_v21 }
0x1a10   :  { %4459 = vmatpush3.msra.mxu0 %v5364_v21  ;;  %v4535_v21 = vunpack.i.l.bf16 %v4534_v53 }
0x1a11   :  { %4460 = vmatprep.subr.mxu0 %v5370_v26 }
0x1a12   :  { %4461 = vmatpush3.msra.mxu0 %v5370_v26  ;;  %v3742_v26 = vsel %vm341_vm0, %v5213_v55, %v4521_v57  ;;  %v3747_v0 = vsel %vm1998_vm3, %v3745_v17, %v4535_v21  ;;  %v4541_v55 = vunpack.i.h.bf16 %v4539_v62 }
0x1a13   :  { %v3744_v32 = vsel %vm1992_vm1, %v3742_v26, %v4526_v10  ;;  %v3749_v60 = vsel %vm2001_vm4, %v3747_v0, %v4540_v38 }
0x1a14   :  { %v3746_v15 = vsel %vm1995_vm2, %v3744_v32, %v4531_v13  ;;  %v3751_v45 = vsel %vm2004_vm5, %v3749_v60, %v4545_v30 }
0x1a15   :  { %v3748_v36 = vsel %vm1998_vm3, %v3746_v15, %v4536_v19 }
0x1a16   :  { %v3750_v56 = vsel %vm2001_vm4, %v3748_v36, %v4541_v55 }
0x1a17   :  { %v3752_v1 = vsel %vm2004_vm5, %v3750_v56, %v4546_v37 }
0x1ab3   :  { %v4429_v47 = vpop.f32.mrf.mxu0 }
0x1ab5   :  { %v3676_v50 = vpop.f32.mrf.mxu0 }
0x1ab6   :  { %v4547_v16 = vpack.i.bf16 %v4429_v47, %v3676_v50 }
0x1ab8   :  { %4548 = vrot.lane.b32.xlu1 %v4547_v16, %s4799_s3 }
0x1b2a   :  { %v4549_v27 = vpop.permute.xlu1 %4548 }
0x1b2b   :  { %v4551_v52 = vunpack.i.h.bf16 %v4549_v27  ;;  %v4550_v22 = vunpack.i.l.bf16 %v4549_v27 }
0x1b2d   :  { %v3753_v14 = vsel %vm2007_vm6, %v3751_v45, %v4550_v22  ;;  %v3754_v18 = vsel %vm2007_vm6, %v3752_v1, %v4551_v52 }
0x1b2e   :  { %4462 = vmatprep.mubr.f32.mxu0 %v3753_v14 }
0x1b2f   :  { %4463 = vmatmul.mubr.f32.vlgmr.msra.gmra.mxu0 %v3754_v18 }
0x1bef   :  { %v4464_v20 = vpop.f32.mrf.mxu0 }
0x1bf0   :  { %v3827_v49 = vadd.f32 %v4464_v20, %v5450_v29 }
0x1bf1   :  { %v3821_v23 = vpop.f32.mrf.mxu0 }
0x1bf2   :  { %3832 = vst [vmem:[#allocation10 + $0x18] sm:$0xff] %v3827_v49  ;;  %v3822_v51 = vadd.f32 %v5450_v29, %v3821_v23 }
0x1bf4   :  { %3831 = vst [vmem:[#allocation10 + $0x10] sm:$0xff] %v3822_v51 }
0x1bf5   :  { %4773 = shalt.err (!%p4770_p10)
}
0x1bf6   :  { %3844 = dma.vmem_to_hbm [thread:$0]  %s3839_s29, 512, %s5652_s6, [#allocation4], %s4792_s26, %s4792_s26, %s4793_s27  }
0x1bf7   :  { %4788 = dma.done.wait [#allocation4], 512  }
0x1bf8   :  { %4789 = vsyncadd [#allocation4], 4294966784 }
0x1bf9   :  { %3848 = vsyncpa [#allocation3], 1 }
0x1bfa   :  { %3849 = vsyncpa [#allocation6], 1 }
0x1bfb   :  { %3850 = vsyncpa [#allocation9], 1 }
0x1bfc   :  { %3851 = vsyncpa [#allocation4], 1 }

</bundles_post_ra>
